<compile_context>
chip_gen: v7x
topology: tpu7x:2x2x1
jax: 0.10.0
libtpu: 0.0.40
codegen_flags: <defaults>
</compile_context>

<pallas_src>
import jax
import jax.numpy as jnp
from jax.experimental import pallas as pl
from jax.experimental.pallas import tpu as pltpu

H1, H2 = 512, 256  # hidden widths of the discriminator MLP


def _disc_kernel(x_ref, w1_ref, b1_ref, w2_ref, b2_ref, w3_ref, b3_ref, o_ref):
    # Layer 1: Linear(D, 512) + LeakyReLU(0.2).  bf16 MXU operands, f32 accum.
    h1 = jnp.dot(x_ref[...], w1_ref[...], preferred_element_type=jnp.float32)
    h1 = h1 + b1_ref[...]
    h1 = jnp.maximum(h1, 0.2 * h1)

    # Layer 2: Linear(512, 256) + LeakyReLU(0.2).
    h2 = jnp.dot(h1.astype(jnp.bfloat16), w2_ref[...],
                 preferred_element_type=jnp.float32)
    h2 = h2 + b2_ref[...]
    h2 = jnp.maximum(h2, 0.2 * h2)

    # Layer 3: Linear(256, 1) + Sigmoid, computed directly as a (1, TB) row so
    # the output store is lane-dense.  (1, H2) x (TB, H2)^T contraction; work
    # is ~0.05% of layer 1, so the MXU slot cost is negligible.
    h3 = jax.lax.dot_general(
        w3_ref[...], h2,
        dimension_numbers=(((1,), (1,)), ((), ())),
        preferred_element_type=jnp.float32,
    ) + b3_ref[...]
    o_ref[...] = jax.nn.sigmoid(h3).astype(o_ref.dtype)


def _round_up(x, m):
    return ((x + m - 1) // m) * m


def _choose_batch_tile(B, tb):
    """Pick (TB, B_pad).

    Keeps the lane-dense output block legal (TB == B_pad or TB % 128 == 0)
    while minimizing padded-row work + per-grid-step overhead.
    """
    B8 = _round_up(B, 8)
    if B8 <= max(tb, 8):
        return B8, B8  # single tile: no pipeline overhead, <= 7 padded rows
    best = None
    for cand in range(128, max(tb, 128) + 1, 128):
        b_pad = _round_up(B, cand)
        # Padded rows run the full layer-1/2 matmuls; each grid step costs
        # ~0.35 us which is roughly a few hundred rows of per-row compute.
        cost = b_pad + 256 * (b_pad // cand)
        if best is None or cost < best[0] or (cost == best[0] and cand > best[1]):
            best = (cost, cand, b_pad)
    return best[1], best[2]


def discriminator_forward(img, params, *, tb=512):
    """img: (B, C, H, W) float32.  Returns validity (B, 1) float32."""
    B = img.shape[0]
    x = img.reshape(B, -1).astype(jnp.bfloat16)  # row-major flatten (torch .view)
    D = x.shape[1]
    w1, b1, w2, b2, w3, b3 = params

    # Lane-align the flattened feature dim: zero-pad x columns and w1 rows.
    D_pad = _round_up(D, 128)
    if D_pad != D:
        x = jnp.pad(x, ((0, 0), (0, D_pad - D)))
        w1 = jnp.pad(w1, ((0, D_pad - D), (0, 0)))

    TB, B_pad = _choose_batch_tile(B, tb)
    if B_pad != B:
        x = jnp.pad(x, ((0, B_pad - B), (0, 0)))
    grid = (B_pad // TB,)

    resident = lambda i: (0, 0)  # weights/biases pinned -> no re-DMA per tile
    out = pl.pallas_call(
        _disc_kernel,
        out_shape=jax.ShapeDtypeStruct((1, B_pad), jnp.float32),  # lane-dense row
        grid=grid,
        in_specs=[
            pl.BlockSpec((TB, D_pad), lambda i: (i, 0)),  # x: batch-tiled, pipelined
            pl.BlockSpec((D_pad, H1), resident),          # w1 (bf16)
            pl.BlockSpec((1, H1), resident),              # b1 (f32)
            pl.BlockSpec((H1, H2), resident),             # w2 (bf16)
            pl.BlockSpec((1, H2), resident),              # b2 (f32)
            pl.BlockSpec((1, H2), resident),              # w3 row (f32)
            pl.BlockSpec((1, 1), resident),               # b3 (f32)
        ],
        out_specs=pl.BlockSpec((1, TB), lambda i: (0, i)),
        compiler_params=pltpu.CompilerParams(
            dimension_semantics=("parallel",),             # megacore: split batch tiles
            vmem_limit_bytes=(32 << 20) if TB >= 1024 else (16 << 20),
        ),
    )(x, w1, b1, w2, b2, w3, b3)
    # (1, B_pad) row -> (B, 1) column, padded rows sliced off.
    return out.reshape(B_pad, 1)[:B]


def init_params(key, in_features):
    """PyTorch-Linear-style init (uniform +-1/sqrt(fan_in)).

    Returns (kernel_params, f32_params):
      kernel_params: w1/w2 as bf16 (in, out), w3 as a (1, 256) f32 row, f32 biases.
      f32_params:    the untouched f32 (in, out) weights for the reference.
    """
    dims = [(in_features, H1), (H1, H2), (H2, 1)]
    raw = []
    for fan_in, fan_out in dims:
        key, kw, kb = jax.random.split(key, 3)
        bound = 1.0 / jnp.sqrt(jnp.float32(fan_in))
        w = jax.random.uniform(kw, (fan_in, fan_out), jnp.float32, -bound, bound)
        b = jax.random.uniform(kb, (1, fan_out), jnp.float32, -bound, bound)
        raw.extend([w, b])
    w1, b1, w2, b2, w3, b3 = raw
    kernel_params = (
        w1.astype(jnp.bfloat16), b1,
        w2.astype(jnp.bfloat16), b2,
        w3.T, b3,                     # (256, 1) -> (1, 256) row
    )
    return kernel_params, tuple(raw)


def _reference_f32(img, f32_params):
    """Pure-JAX f32 reference of the PyTorch forward."""
    x = img.reshape(img.shape[0], -1)
    w1, b1, w2, b2, w3, b3 = f32_params
    h = x @ w1 + b1
    h = jnp.maximum(h, 0.2 * h)
    h = h @ w2 + b2
    h = jnp.maximum(h, 0.2 * h)
    h = h @ w3 + b3
    return jax.nn.sigmoid(h)


def _reference_bf16(img, kernel_params):
    """Reference mirroring the kernel's bf16-operand / f32-accumulate math."""
    x = img.reshape(img.shape[0], -1).astype(jnp.bfloat16)
    w1, b1, w2, b2, w3r, b3 = kernel_params
    h = jnp.dot(x, w1, preferred_element_type=jnp.float32) + b1
    h = jnp.maximum(h, 0.2 * h)
    h = jnp.dot(h.astype(jnp.bfloat16), w2, preferred_element_type=jnp.float32) + b2
    h = jnp.maximum(h, 0.2 * h)
    h = jnp.sum(h * w3r, axis=-1, keepdims=True) + b3
    return jax.nn.sigmoid(h)


if __name__ == "__main__":
    key = jax.random.PRNGKey(0)
    k_img, k_par = jax.random.split(key)

    B, C, H, W = 2, 4, 16, 16          # img_shape = (4, 16, 16)
    in_features = C * H * W            # 1024

    img = jax.random.normal(k_img, (B, C, H, W), jnp.float32)
    kernel_params, f32_params = init_params(k_par, in_features)

    validity = discriminator_forward(img, kernel_params)
    jax.block_until_ready(validity)

    assert validity.shape == (B, 1)
    assert bool(jnp.all(jnp.isfinite(validity)))

    # Tight check against a reference doing the same bf16/f32 mixed math.
    ref_bf16 = _reference_bf16(img, kernel_params)
    assert jnp.allclose(validity, ref_bf16, atol=2e-3, rtol=2e-3)

    # Loose check against the pure-f32 PyTorch-equivalent math (bf16 rounding).
    ref_f32 = _reference_f32(img, f32_params)
    assert jnp.allclose(validity, ref_f32, atol=3e-2, rtol=3e-2)

    print("KERNEL_OK")
</pallas_src>

<mosaic_0001>
module attributes {stable_mosaic.version = 11 : i64} {
  func.func @_disc_kernel(%arg0: i32, %arg1: memref<8x1024xbf16, #tpu.memory_space<vmem>>, %arg2: memref<1024x512xbf16, #tpu.memory_space<vmem>>, %arg3: memref<1x512xf32, #tpu.memory_space<vmem>>, %arg4: memref<512x256xbf16, #tpu.memory_space<vmem>>, %arg5: memref<1x256xf32, #tpu.memory_space<vmem>>, %arg6: memref<1x256xf32, #tpu.memory_space<vmem>>, %arg7: memref<1x1xf32, #tpu.memory_space<vmem>>, %arg8: memref<1x8xf32, #tpu.memory_space<vmem>>) attributes {dimension_semantics = [#tpu.dimension_semantics<parallel>], iteration_bounds = array<i64: 1>, scalar_prefetch = 0 : i64, scratch_operands = 0 : i64, tpu.core_type = #tpu.core_type<tc>, window_params = [{transform_indices = @transform_0, window_bounds = array<i64: 8, 1024>}, {pipeline_mode = #tpu.pipeline_mode<synchronous>, transform_indices = @transform_1, window_bounds = array<i64: 1024, 512>}, {pipeline_mode = #tpu.pipeline_mode<synchronous>, transform_indices = @transform_2, window_bounds = array<i64: 1, 512>}, {pipeline_mode = #tpu.pipeline_mode<synchronous>, transform_indices = @transform_3, window_bounds = array<i64: 512, 256>}, {pipeline_mode = #tpu.pipeline_mode<synchronous>, transform_indices = @transform_4, window_bounds = array<i64: 1, 256>}, {pipeline_mode = #tpu.pipeline_mode<synchronous>, transform_indices = @transform_5, window_bounds = array<i64: 1, 256>}, {pipeline_mode = #tpu.pipeline_mode<synchronous>, transform_indices = @transform_6, window_bounds = array<i64: 1, 1>}, {transform_indices = @transform_7, window_bounds = array<i64: 1, 8>}]} {
    %c0 = arith.constant 0 : index
    %c0_0 = arith.constant 0 : index
    %0 = vector.load %arg1[%c0, %c0_0] : memref<8x1024xbf16, #tpu.memory_space<vmem>>, vector<8x1024xbf16>
    %c0_1 = arith.constant 0 : index
    %c0_2 = arith.constant 0 : index
    %1 = vector.load %arg2[%c0_1, %c0_2] : memref<1024x512xbf16, #tpu.memory_space<vmem>>, vector<1024x512xbf16>
    %cst = arith.constant dense<0.000000e+00> : vector<8x512xf32>
    %2 = tpu.matmul %0, %1, %cst {dimension_numbers = #tpu.dot_dimension_numbers<[1], [0], [0], [1], [0, 0, 1, 1], [], []>} : vector<8x1024xbf16>, vector<1024x512xbf16>, vector<8x512xf32> -> vector<8x512xf32>
    %c0_3 = arith.constant 0 : index
    %c0_4 = arith.constant 0 : index
    %3 = vector.load %arg3[%c0_3, %c0_4] : memref<1x512xf32, #tpu.memory_space<vmem>>, vector<1x512xf32>
    %4 = vector.broadcast %3 : vector<1x512xf32> to vector<8x512xf32>
    %5 = arith.addf %2, %4 : vector<8x512xf32>
    %cst_5 = arith.constant 2.000000e-01 : f32
    %6 = vector.broadcast %cst_5 : f32 to vector<8x512xf32>
    %7 = arith.mulf %6, %5 : vector<8x512xf32>
    %8 = arith.maximumf %5, %7 : vector<8x512xf32>
    %9 = arith.truncf %8 : vector<8x512xf32> to vector<8x512xbf16>
    %c0_6 = arith.constant 0 : index
    %c0_7 = arith.constant 0 : index
    %10 = vector.load %arg4[%c0_6, %c0_7] : memref<512x256xbf16, #tpu.memory_space<vmem>>, vector<512x256xbf16>
    %cst_8 = arith.constant dense<0.000000e+00> : vector<8x256xf32>
    %11 = tpu.matmul %9, %10, %cst_8 {dimension_numbers = #tpu.dot_dimension_numbers<[1], [0], [0], [1], [0, 0, 1, 1], [], []>} : vector<8x512xbf16>, vector<512x256xbf16>, vector<8x256xf32> -> vector<8x256xf32>
    %c0_9 = arith.constant 0 : index
    %c0_10 = arith.constant 0 : index
    %12 = vector.load %arg5[%c0_9, %c0_10] : memref<1x256xf32, #tpu.memory_space<vmem>>, vector<1x256xf32>
    %13 = vector.broadcast %12 : vector<1x256xf32> to vector<8x256xf32>
    %14 = arith.addf %11, %13 : vector<8x256xf32>
    %cst_11 = arith.constant 2.000000e-01 : f32
    %15 = vector.broadcast %cst_11 : f32 to vector<8x256xf32>
    %16 = arith.mulf %15, %14 : vector<8x256xf32>
    %17 = arith.maximumf %14, %16 : vector<8x256xf32>
    %c0_12 = arith.constant 0 : index
    %c0_13 = arith.constant 0 : index
    %18 = vector.load %arg6[%c0_12, %c0_13] : memref<1x256xf32, #tpu.memory_space<vmem>>, vector<1x256xf32>
    %cst_14 = arith.constant dense<0.000000e+00> : vector<1x8xf32>
    %19 = tpu.matmul %18, %17, %cst_14 {dimension_numbers = #tpu.dot_dimension_numbers<[1], [1], [0], [0], [0, 0, 1, 0], [], []>} : vector<1x256xf32>, vector<8x256xf32>, vector<1x8xf32> -> vector<1x8xf32>
    %c0_15 = arith.constant 0 : index
    %c0_16 = arith.constant 0 : index
    %20 = vector.load %arg7[%c0_15, %c0_16] : memref<1x1xf32, #tpu.memory_space<vmem>>, vector<1x1xf32>
    %21 = vector.broadcast %20 : vector<1x1xf32> to vector<1x8xf32>
    %22 = arith.addf %19, %21 : vector<1x8xf32>
    %23 = arith.negf %22 : vector<1x8xf32>
    %24 = math.exp %23 : vector<1x8xf32>
    %cst_17 = arith.constant 1.000000e+00 : f32
    %25 = vector.broadcast %cst_17 : f32 to vector<1x8xf32>
    %26 = arith.addf %25, %24 : vector<1x8xf32>
    %27 = arith.divf %25, %26 : vector<1x8xf32>
    %c0_18 = arith.constant 0 : index
    %c0_19 = arith.constant 0 : index
    %28 = vector.load %arg8[%c0_18, %c0_19] : memref<1x8xf32, #tpu.memory_space<vmem>>, vector<1x8xf32>
    tpu.vector_store %arg8[%c0_18, %c0_19], %27 {strides = array<i32>} : memref<1x8xf32, #tpu.memory_space<vmem>>, vector<1x8xf32>,
    return
  }
  func.func @transform_0(%arg0: i32) -> (i32, i32) {
    %c0_i32 = arith.constant 0 : i32
    %c0_i32_0 = arith.constant 0 : i32
    return %arg0, %c0_i32 : i32, i32
  }
  func.func @transform_1(%arg0: i32) -> (i32, i32) {
    %c0_i32 = arith.constant 0 : i32
    %c0_i32_0 = arith.constant 0 : i32
    %c0_i32_1 = arith.constant 0 : i32
    return %c0_i32, %c0_i32_0 : i32, i32
  }
  func.func @transform_2(%arg0: i32) -> (i32, i32) {
    %c0_i32 = arith.constant 0 : i32
    %c0_i32_0 = arith.constant 0 : i32
    %c0_i32_1 = arith.constant 0 : i32
    return %c0_i32, %c0_i32_0 : i32, i32
  }
  func.func @transform_3(%arg0: i32) -> (i32, i32) {
    %c0_i32 = arith.constant 0 : i32
    %c0_i32_0 = arith.constant 0 : i32
    %c0_i32_1 = arith.constant 0 : i32
    return %c0_i32, %c0_i32_0 : i32, i32
  }
  func.func @transform_4(%arg0: i32) -> (i32, i32) {
    %c0_i32 = arith.constant 0 : i32
    %c0_i32_0 = arith.constant 0 : i32
    %c0_i32_1 = arith.constant 0 : i32
    return %c0_i32, %c0_i32_0 : i32, i32
  }
  func.func @transform_5(%arg0: i32) -> (i32, i32) {
    %c0_i32 = arith.constant 0 : i32
    %c0_i32_0 = arith.constant 0 : i32
    %c0_i32_1 = arith.constant 0 : i32
    return %c0_i32, %c0_i32_0 : i32, i32
  }
  func.func @transform_6(%arg0: i32) -> (i32, i32) {
    %c0_i32 = arith.constant 0 : i32
    %c0_i32_0 = arith.constant 0 : i32
    %c0_i32_1 = arith.constant 0 : i32
    return %c0_i32, %c0_i32_0 : i32, i32
  }
  func.func @transform_7(%arg0: i32) -> (i32, i32) {
    %c0_i32 = arith.constant 0 : i32
    %c0_i32_0 = arith.constant 0 : i32
    return %c0_i32, %arg0 : i32, i32
  }
}

</mosaic_0001>

<bundles_post_ra>
// kernel: tpu_custom_call.1
= control target key start
LH: loop header
LB: loop body
LE: loop exit
PB: predicated region body
PF: predicated region fallthrough
CT: control target
= control target key end

     0   :  { %s3729_s0 = inlined_call_operand.hbm [shape: bf16[8,1024], index: 0, kind: input, shape index: {}]   ;;  %s3730_s1 = inlined_call_operand.hbm [shape: bf16[1024,512], index: 1, kind: input, shape index: {}]   ;;  %s3731_s2 = inlined_call_operand.vmem [shape: f32[1,512], index: 2, kind: input, shape index: {}]   ;;  %s3732_s3 = inlined_call_operand.hbm [shape: bf16[512,256], index: 3, kind: input, shape index: {}]   ;;  %s3733_s4 = inlined_call_operand.vmem [shape: f32[1,256], index: 4, kind: input, shape index: {}]   ;;  %s3734_s5 = inlined_call_operand.vmem [shape: f32[1,256], index: 5, kind: input, shape index: {}]   ;;  %s3735_s6 = inlined_call_operand.<no memory space> [shape: f32[1,1], index: 6, kind: input, shape index: {}]   ;;  %s3736_s7 = inlined_call_operand.hbm [shape: f32[1,8], index: 7, kind: output, shape index: {}]  }
   0x1   :  { %v12_v0 = vstv %s3735_s6 }
   0x2   :  { %13 = vst [vmem:[#allocation2] sm:$0x1] %v12_v0 }
   0x3   :  { %14 = vsyncpa [#allocation4], 0 }
   0x4   :  { %15 = vsyncpa [#allocation7], 0 }
   0x5   :  { %16 = vsyncpa [#allocation5], 0  ;;  %s3553_s26 = smov [#allocation6]   ;;  %s3459_s30 = scalar_lea.hbm %s3730_s1, 32768 }
   0x6   :  { %s32_s27 = sshll.u32 %s3553_s26, 4  ;;  %p3460_p0 = scmp.ne.s32.totalorder %s3730_s1, %s3459_s30  ;;  %s33_s27 = int_to_ptr.vmem [resolvable:$true] %s32_s27 }
   0x7   :  { %p3463_p1 = scmp.lt.u32.totalorder %s3459_s30, %s3730_s1 }
   0x9   :  { %p3465_p2 = pnand %p3463_p1, %p3460_p0 }
   0xb   :  { %3468 = shalt.err (!%p3465_p2)
}
   0xc   :  { %s3469_s6 = scalar_lea.vmem %s33_s27, 32768  ;;  %p3474_p4 = scmp.lt.s32.totalorder %s33_s27, %s33_s27 }
   0xd   :  { %p3470_p3 = scmp.ne.s32.totalorder %s33_s27, %s3469_s6  ;;  %p3475_p5 = scmp.lt.s32.totalorder %s3469_s6, %s3469_s6 }
   0xf   :  { %p3476_p6 = por %p3475_p5, %p3474_p4 }
  0x11   :  { %p3477_p7 = pnand %p3476_p6, %p3470_p3 }
  0x13   :  { %3480 = shalt.err (!%p3477_p7)
}
  0x14   :  { %s3554_s12 = smov 256   ;;  %s3555_s13 = smov 16  }
  0x15   :  { %38 = dma.hbm_to_vmem [thread:$0]  %s3730_s1, 32768, %s33_s27, [#allocation7], %s3554_s12, %s3554_s12, %s3555_s13  }
  0x16   :  { %s3556_s16 = smov [#allocation3]   ;;  %s3557_s18 = smov [#allocation8]  }
  0x17   :  { %s23_s17 = sshll.u32 %s3556_s16, 4  ;;  %s46_s19 = sshll.u32 %s3557_s18, 4  ;;  %s24_s17 = int_to_ptr.vmem [resolvable:$true] %s23_s17  ;;  %s47_s19 = int_to_ptr.vmem [resolvable:$true] %s46_s19 }
  0x18   :  { %s3481_s22 = scalar_lea.hbm %s3729_s0, 512 }
  0x19   :  { %p3482_p8 = scmp.ne.s32.totalorder %s3729_s0, %s3481_s22  ;;  %p3485_p9 = scmp.lt.u32.totalorder %s3481_s22, %s3729_s0 }
  0x1b   :  { %p3487_p10 = pnand %p3485_p9, %p3482_p8 }
  0x1d   :  { %3490 = shalt.err (!%p3487_p10)
}
  0x1e   :  { %s3491_s1 = scalar_lea.vmem %s24_s17, 512  ;;  %p3496_p12 = scmp.lt.s32.totalorder %s24_s17, %s24_s17 }
  0x1f   :  { %p3492_p11 = scmp.ne.s32.totalorder %s24_s17, %s3491_s1  ;;  %p3497_p13 = scmp.lt.s32.totalorder %s3491_s1, %s3491_s1 }
  0x21   :  { %p3498_p0 = por %p3497_p13, %p3496_p12 }
  0x23   :  { %p3499_p1 = pnand %p3498_p0, %p3492_p11 }
  0x25   :  { %3502 = shalt.err (!%p3499_p1)
}
  0x26   :  { %26 = dma.hbm_to_vmem [thread:$0]  %s3729_s0, 512, %s24_s17, [#allocation4]  }
  0x27   :  { %s3503_s8 = scalar_lea.hbm %s3732_s3, 8192 }
  0x28   :  { %p3504_p2 = scmp.ne.s32.totalorder %s3732_s3, %s3503_s8  ;;  %p3507_p3 = scmp.lt.u32.totalorder %s3503_s8, %s3732_s3 }
  0x2a   :  { %p3509_p4 = pnand %p3507_p3, %p3504_p2 }
  0x2c   :  { %3512 = shalt.err (!%p3509_p4)
}
  0x2d   :  { %s3513_s12 = scalar_lea.vmem %s47_s19, 8192  ;;  %p3518_p6 = scmp.lt.s32.totalorder %s47_s19, %s47_s19 }
  0x2e   :  { %p3514_p5 = scmp.ne.s32.totalorder %s47_s19, %s3513_s12  ;;  %p3519_p7 = scmp.lt.s32.totalorder %s3513_s12, %s3513_s12 }
  0x30   :  { %p3520_p8 = por %p3519_p7, %p3518_p6 }
  0x32   :  { %p3521_p9 = pnand %p3520_p8, %p3514_p5 }
  0x34   :  { %3524 = shalt.err (!%p3521_p9)
}
  0x35   :  { %s3558_s0 = smov 128   ;;  %s3559_s13 = smov 8  }
  0x36   :  { %52 = dma.hbm_to_vmem [thread:$0]  %s3732_s3, 8192, %s47_s19, [#allocation7], %s3558_s0, %s3558_s0, %s3559_s13  }
  0x37   :  { %3547 = dma.done.wait [#allocation4], 512  }
  0x38   :  { %3548 = vsyncadd [#allocation4], 4294966784 }
  0x39   :  { %3549 = dma.done.wait [#allocation7], 40960  }
  0x3a   :  { %3550 = vsyncadd [#allocation7], 4294926336  ;;  %v2967_v1 = vld [vmem:[#allocation6 + $0x4] ss:$16 sps:$4 sm:$0xff]   ;;  %v2971_v3 = vld [vmem:[#allocation6] ss:$16 sps:$4 sm:$0xff]  }
  0x3b   :  { %v2969_v2 = vld [vmem:[#allocation6 + $0x204] ss:$16 sps:$4 sm:$0xff]   ;;  %1658 = vmatprep.subr.bf16.mxu1 %v2967_v1  ;;  %v2972_v4 = vld [vmem:[#allocation6 + $0x200] ss:$16 sps:$4 sm:$0xff]   ;;  %v69_v49 = vld [vmem:[#allocation3 + $0x8] sm:$0xff]  ;;  %vm2578_vm0 = vcmask 57344  }
  0x3c   :  { %1699 = vmatprep.subr.bf16.mxu0 %v2969_v2  ;;  %v2973_v5 = vld [vmem:[#allocation6 + $0x24] ss:$16 sps:$4 sm:$0xff]   ;;  %1659 = vmatpush1.bf16.msra.mxu1 %v2971_v3  ;;  %v2977_v7 = vld [vmem:[#allocation6 + $0x20] ss:$16 sps:$4 sm:$0xff]   ;;  %v3643_v52 = vcombine.high %v69_v49, %v69_v49 }
  0x3d   :  { %1700 = vmatpush1.bf16.msra.mxu0 %v2972_v4  ;;  %v2975_v6 = vld [vmem:[#allocation6 + $0x224] ss:$16 sps:$4 sm:$0xff]   ;;  %1660 = vmatprep.subr.bf16.mxu1 %v2973_v5  ;;  %v2978_v8 = vld [vmem:[#allocation6 + $0x220] ss:$16 sps:$4 sm:$0xff]  }
  0x3e   :  { %1701 = vmatprep.subr.bf16.mxu0 %v2975_v6  ;;  %v2979_v9 = vld [vmem:[#allocation6 + $0x44] ss:$16 sps:$4 sm:$0xff]   ;;  %v2983_v11 = vld [vmem:[#allocation6 + $0x40] ss:$16 sps:$4 sm:$0xff]   ;;  %1731 = vmatprep.mubr.bf16.mxu0 %v3643_v52  ;;  %v3072_v6 = vld [vmem:[#allocation6 + $0xc] ss:$16 sps:$4 sm:$0xff]  }
  0x3f   :  { %v2981_v10 = vld [vmem:[#allocation6 + $0x244] ss:$16 sps:$4 sm:$0xff]   ;;  %v2984_v12 = vld [vmem:[#allocation6 + $0x240] ss:$16 sps:$4 sm:$0xff]  }
  0x40   :  { %1661 = vmatpush1.bf16.msra.mxu1 %v2977_v7  ;;  %v2985_v13 = vld [vmem:[#allocation6 + $0x64] ss:$16 sps:$4 sm:$0xff]   ;;  %v2989_v15 = vld [vmem:[#allocation6 + $0x60] ss:$16 sps:$4 sm:$0xff]  }
  0x41   :  { %1702 = vmatpush1.bf16.msra.mxu0 %v2978_v8  ;;  %1662 = vmatprep.subr.bf16.mxu1 %v2979_v9  ;;  %v2987_v14 = vld [vmem:[#allocation6 + $0x264] ss:$16 sps:$4 sm:$0xff]   ;;  %v2990_v16 = vld [vmem:[#allocation6 + $0x260] ss:$16 sps:$4 sm:$0xff]   ;;  %v3649_v8 = vcombine.low %v69_v49, %v69_v49 }
  0x42   :  { %1703 = vmatprep.subr.bf16.mxu0 %v2981_v10  ;;  %v2991_v17 = vld [vmem:[#allocation6 + $0x84] ss:$16 sps:$4 sm:$0xff]   ;;  %v2995_v19 = vld [vmem:[#allocation6 + $0x80] ss:$16 sps:$4 sm:$0xff]   ;;  %v3070_v10 = vld [vmem:[#allocation6 + $0x8] ss:$16 sps:$4 sm:$0xff]  }
  0x43   :  { %v2993_v18 = vld [vmem:[#allocation6 + $0x284] ss:$16 sps:$4 sm:$0xff]   ;;  %v2996_v20 = vld [vmem:[#allocation6 + $0x280] ss:$16 sps:$4 sm:$0xff]  }
  0x44   :  { %1663 = vmatpush1.bf16.msra.mxu1 %v2983_v11  ;;  %v2997_v21 = vld [vmem:[#allocation6 + $0xa4] ss:$16 sps:$4 sm:$0xff]   ;;  %v3001_v23 = vld [vmem:[#allocation6 + $0xa0] ss:$16 sps:$4 sm:$0xff]  }
  0x45   :  { %1704 = vmatpush1.bf16.msra.mxu0 %v2984_v12  ;;  %1664 = vmatprep.subr.bf16.mxu1 %v2985_v13  ;;  %v2999_v22 = vld [vmem:[#allocation6 + $0x2a4] ss:$16 sps:$4 sm:$0xff]   ;;  %v3002_v24 = vld [vmem:[#allocation6 + $0x2a0] ss:$16 sps:$4 sm:$0xff]   ;;  %v3078_v12 = vld [vmem:[#allocation6 + $0x2c] ss:$16 sps:$4 sm:$0xff]  }
  0x46   :  { %1705 = vmatprep.subr.bf16.mxu0 %v2987_v14  ;;  %v3003_v25 = vld [vmem:[#allocation6 + $0xc4] ss:$16 sps:$4 sm:$0xff]   ;;  %v3007_v27 = vld [vmem:[#allocation6 + $0xc0] ss:$16 sps:$4 sm:$0xff]   ;;  %v3076_v14 = vld [vmem:[#allocation6 + $0x28] ss:$16 sps:$4 sm:$0xff]  }
  0x47   :  { %v3005_v26 = vld [vmem:[#allocation6 + $0x2c4] ss:$16 sps:$4 sm:$0xff]   ;;  %v3008_v28 = vld [vmem:[#allocation6 + $0x2c0] ss:$16 sps:$4 sm:$0xff]  }
  0x48   :  { %1665 = vmatpush1.bf16.msra.mxu1 %v2989_v15  ;;  %v3009_v29 = vld [vmem:[#allocation6 + $0xe4] ss:$16 sps:$4 sm:$0xff]   ;;  %v3013_v31 = vld [vmem:[#allocation6 + $0xe0] ss:$16 sps:$4 sm:$0xff]  }
  0x49   :  { %1706 = vmatpush1.bf16.msra.mxu0 %v2990_v16  ;;  %1666 = vmatprep.subr.bf16.mxu1 %v2991_v17  ;;  %v3011_v30 = vld [vmem:[#allocation6 + $0x2e4] ss:$16 sps:$4 sm:$0xff]   ;;  %v3014_v32 = vld [vmem:[#allocation6 + $0x2e0] ss:$16 sps:$4 sm:$0xff]   ;;  %v3084_v16 = vld [vmem:[#allocation6 + $0x4c] ss:$16 sps:$4 sm:$0xff]  }
  0x4a   :  { %1707 = vmatprep.subr.bf16.mxu0 %v2993_v18  ;;  %v3015_v33 = vld [vmem:[#allocation6 + $0x104] ss:$16 sps:$4 sm:$0xff]   ;;  %v3019_v35 = vld [vmem:[#allocation6 + $0x100] ss:$16 sps:$4 sm:$0xff]   ;;  %v3082_v18 = vld [vmem:[#allocation6 + $0x48] ss:$16 sps:$4 sm:$0xff]  }
  0x4b   :  { %v3017_v34 = vld [vmem:[#allocation6 + $0x304] ss:$16 sps:$4 sm:$0xff]   ;;  %v3020_v36 = vld [vmem:[#allocation6 + $0x300] ss:$16 sps:$4 sm:$0xff]  }
  0x4c   :  { %1667 = vmatpush1.bf16.msra.mxu1 %v2995_v19  ;;  %v3021_v37 = vld [vmem:[#allocation6 + $0x124] ss:$16 sps:$4 sm:$0xff]   ;;  %v3025_v39 = vld [vmem:[#allocation6 + $0x120] ss:$16 sps:$4 sm:$0xff]  }
  0x4d   :  { %1708 = vmatpush1.bf16.msra.mxu0 %v2996_v20  ;;  %1668 = vmatprep.subr.bf16.mxu1 %v2997_v21  ;;  %v3023_v38 = vld [vmem:[#allocation6 + $0x324] ss:$16 sps:$4 sm:$0xff]   ;;  %v3026_v40 = vld [vmem:[#allocation6 + $0x320] ss:$16 sps:$4 sm:$0xff]   ;;  %v3090_v20 = vld [vmem:[#allocation6 + $0x6c] ss:$16 sps:$4 sm:$0xff]  }
  0x4e   :  { %1709 = vmatprep.subr.bf16.mxu0 %v2999_v22  ;;  %v3027_v41 = vld [vmem:[#allocation6 + $0x144] ss:$16 sps:$4 sm:$0xff]   ;;  %v3031_v43 = vld [vmem:[#allocation6 + $0x140] ss:$16 sps:$4 sm:$0xff]   ;;  %v3088_v22 = vld [vmem:[#allocation6 + $0x68] ss:$16 sps:$4 sm:$0xff]  }
  0x4f   :  { %v3029_v42 = vld [vmem:[#allocation6 + $0x344] ss:$16 sps:$4 sm:$0xff]   ;;  %v3032_v44 = vld [vmem:[#allocation6 + $0x340] ss:$16 sps:$4 sm:$0xff]  }
  0x50   :  { %1669 = vmatpush1.bf16.msra.mxu1 %v3001_v23  ;;  %v3033_v45 = vld [vmem:[#allocation6 + $0x164] ss:$16 sps:$4 sm:$0xff]   ;;  %v3037_v50 = vld [vmem:[#allocation6 + $0x160] ss:$16 sps:$4 sm:$0xff]  }
  0x51   :  { %1710 = vmatpush1.bf16.msra.mxu0 %v3002_v24  ;;  %1670 = vmatprep.subr.bf16.mxu1 %v3003_v25  ;;  %v3035_v46 = vld [vmem:[#allocation6 + $0x364] ss:$16 sps:$4 sm:$0xff]   ;;  %v3038_v51 = vld [vmem:[#allocation6 + $0x360] ss:$16 sps:$4 sm:$0xff]   ;;  %v3096_v24 = vld [vmem:[#allocation6 + $0x8c] ss:$16 sps:$4 sm:$0xff]  }
  0x52   :  { %1711 = vmatprep.subr.bf16.mxu0 %v3005_v26  ;;  %v68_v47 = vld [vmem:[#allocation3] sm:$0xff]  ;;  %v3094_v26 = vld [vmem:[#allocation6 + $0x88] ss:$16 sps:$4 sm:$0xff]  }
  0x53   :  { %v3641_v48 = vcombine.high %v68_v47, %v68_v47  ;;  %v3039_v53 = vld [vmem:[#allocation6 + $0x184] ss:$16 sps:$4 sm:$0xff]   ;;  %v3043_v55 = vld [vmem:[#allocation6 + $0x180] ss:$16 sps:$4 sm:$0xff]   ;;  %v3647_v7 = vcombine.low %v68_v47, %v68_v47 }
  0x54   :  { %1671 = vmatpush1.bf16.msra.mxu1 %v3007_v27  ;;  %v3041_v54 = vld [vmem:[#allocation6 + $0x384] ss:$16 sps:$4 sm:$0xff]   ;;  %v3044_v56 = vld [vmem:[#allocation6 + $0x380] ss:$16 sps:$4 sm:$0xff]  }
  0x55   :  { %1712 = vmatpush1.bf16.msra.mxu0 %v3008_v28  ;;  %1672 = vmatprep.subr.bf16.mxu1 %v3009_v29  ;;  %v3045_v57 = vld [vmem:[#allocation6 + $0x1a4] ss:$16 sps:$4 sm:$0xff]   ;;  %v3049_v59 = vld [vmem:[#allocation6 + $0x1a0] ss:$16 sps:$4 sm:$0xff]   ;;  %v3102_v28 = vld [vmem:[#allocation6 + $0xac] ss:$16 sps:$4 sm:$0xff]  }
  0x56   :  { %1713 = vmatprep.subr.bf16.mxu0 %v3011_v30  ;;  %1690 = vmatprep.mubr.bf16.mxu1 %v3641_v48  ;;  %v3047_v58 = vld [vmem:[#allocation6 + $0x3a4] ss:$16 sps:$4 sm:$0xff]   ;;  %v3050_v60 = vld [vmem:[#allocation6 + $0x3a0] ss:$16 sps:$4 sm:$0xff]   ;;  %v3100_v30 = vld [vmem:[#allocation6 + $0xa8] ss:$16 sps:$4 sm:$0xff]  }
  0x57   :  { %v3051_v61 = vld [vmem:[#allocation6 + $0x1c4] ss:$16 sps:$4 sm:$0xff]   ;;  %v3055_v63 = vld [vmem:[#allocation6 + $0x1c0] ss:$16 sps:$4 sm:$0xff]  }
  0x58   :  { %1673 = vmatpush1.bf16.msra.mxu1 %v3013_v31  ;;  %v3053_v62 = vld [vmem:[#allocation6 + $0x3c4] ss:$16 sps:$4 sm:$0xff]   ;;  %v3056_v0 = vld [vmem:[#allocation6 + $0x3c0] ss:$16 sps:$4 sm:$0xff]  }
  0x59   :  { %1714 = vmatpush1.bf16.msra.mxu0 %v3014_v32  ;;  %1674 = vmatprep.subr.bf16.mxu1 %v3015_v33  ;;  %v3057_v1 = vld [vmem:[#allocation6 + $0x1e4] ss:$16 sps:$4 sm:$0xff]   ;;  %v3061_v3 = vld [vmem:[#allocation6 + $0x1e0] ss:$16 sps:$4 sm:$0xff]   ;;  %v3108_v32 = vld [vmem:[#allocation6 + $0xcc] ss:$16 sps:$4 sm:$0xff]  }
  0x5a   :  { %1715 = vmatprep.subr.bf16.mxu0 %v3017_v34  ;;  %v3059_v2 = vld [vmem:[#allocation6 + $0x3e4] ss:$16 sps:$4 sm:$0xff]   ;;  %v3062_v4 = vld [vmem:[#allocation6 + $0x3e0] ss:$16 sps:$4 sm:$0xff]  }
  0x5b   :  { %v3069_v5 = vld [vmem:[#allocation6 + $0x404] ss:$16 sps:$4 sm:$0xff]   ;;  %v3067_v9 = vld [vmem:[#allocation6 + $0x400] ss:$16 sps:$4 sm:$0xff]  }
  0x5c   :  { %1675 = vmatpush1.bf16.msra.mxu1 %v3019_v35  ;;  %v3075_v11 = vld [vmem:[#allocation6 + $0x424] ss:$16 sps:$4 sm:$0xff]   ;;  %v3073_v13 = vld [vmem:[#allocation6 + $0x420] ss:$16 sps:$4 sm:$0xff]  }
  0x5d   :  { %1716 = vmatpush1.bf16.msra.mxu0 %v3020_v36  ;;  %1676 = vmatprep.subr.bf16.mxu1 %v3021_v37  ;;  %v3081_v15 = vld [vmem:[#allocation6 + $0x444] ss:$16 sps:$4 sm:$0xff]   ;;  %v3079_v17 = vld [vmem:[#allocation6 + $0x440] ss:$16 sps:$4 sm:$0xff]   ;;  %v3106_v36 = vld [vmem:[#allocation6 + $0xc8] ss:$16 sps:$4 sm:$0xff]  }
  0x5e   :  { %1717 = vmatprep.subr.bf16.mxu0 %v3023_v38  ;;  %v3087_v19 = vld [vmem:[#allocation6 + $0x464] ss:$16 sps:$4 sm:$0xff]   ;;  %v3085_v21 = vld [vmem:[#allocation6 + $0x460] ss:$16 sps:$4 sm:$0xff]   ;;  %v3114_v38 = vld [vmem:[#allocation6 + $0xec] ss:$16 sps:$4 sm:$0xff]  }
  0x5f   :  { %v3093_v23 = vld [vmem:[#allocation6 + $0x484] ss:$16 sps:$4 sm:$0xff]   ;;  %v3091_v25 = vld [vmem:[#allocation6 + $0x480] ss:$16 sps:$4 sm:$0xff]  }
  0x60   :  { %1677 = vmatpush1.bf16.msra.mxu1 %v3025_v39  ;;  %v3099_v27 = vld [vmem:[#allocation6 + $0x4a4] ss:$16 sps:$4 sm:$0xff]   ;;  %v3097_v29 = vld [vmem:[#allocation6 + $0x4a0] ss:$16 sps:$4 sm:$0xff]  }
  0x61   :  { %1718 = vmatpush1.bf16.msra.mxu0 %v3026_v40  ;;  %1678 = vmatprep.subr.bf16.mxu1 %v3027_v41  ;;  %v3105_v31 = vld [vmem:[#allocation6 + $0x4c4] ss:$16 sps:$4 sm:$0xff]   ;;  %v3103_v34 = vld [vmem:[#allocation6 + $0x4c0] ss:$16 sps:$4 sm:$0xff]   ;;  %v3112_v40 = vld [vmem:[#allocation6 + $0xe8] ss:$16 sps:$4 sm:$0xff]  }
  0x62   :  { %1719 = vmatprep.subr.bf16.mxu0 %v3029_v42  ;;  %v3654_v33 = vld [vmem:[#allocation3 + $0x10] sm:$0xff]  ;;  %v3120_v42 = vld [vmem:[#allocation6 + $0x10c] ss:$16 sps:$4 sm:$0xff]  }
  0x63   :  { %v3658_v35 = vcombine.high %v3654_v33, %v3654_v33  ;;  %v3111_v37 = vld [vmem:[#allocation6 + $0x4e4] ss:$16 sps:$4 sm:$0xff]   ;;  %v3109_v39 = vld [vmem:[#allocation6 + $0x4e0] ss:$16 sps:$4 sm:$0xff]  }
  0x64   :  { %1679 = vmatpush1.bf16.msra.mxu1 %v3031_v43  ;;  %v3117_v41 = vld [vmem:[#allocation6 + $0x504] ss:$16 sps:$4 sm:$0xff]   ;;  %v3115_v43 = vld [vmem:[#allocation6 + $0x500] ss:$16 sps:$4 sm:$0xff]  }
  0x65   :  { %1720 = vmatpush1.bf16.msra.mxu0 %v3032_v44  ;;  %1680 = vmatprep.subr.bf16.mxu1 %v3033_v45  ;;  %v3118_v44 = vld [vmem:[#allocation6 + $0x108] ss:$16 sps:$4 sm:$0xff]   ;;  %v3123_v45 = vld [vmem:[#allocation6 + $0x524] ss:$16 sps:$4 sm:$0xff]   ;;  %v3121_v47 = vld [vmem:[#allocation6 + $0x520] ss:$16 sps:$4 sm:$0xff]  }
  0x66   :  { %1721 = vmatprep.subr.bf16.mxu0 %v3035_v46  ;;  %v3126_v46 = vld [vmem:[#allocation6 + $0x12c] ss:$16 sps:$4 sm:$0xff]   ;;  %v3129_v49 = vld [vmem:[#allocation6 + $0x544] ss:$16 sps:$4 sm:$0xff]  }
  0x68   :  { %1681 = vmatpush1.bf16.msra.mxu1 %v3037_v50  ;;  %v3132_v50 = vld [vmem:[#allocation6 + $0x14c] ss:$16 sps:$4 sm:$0xff]  }
  0x69   :  { %1722 = vmatpush1.bf16.msra.mxu0 %v3038_v51  ;;  %1682 = vmatprep.subr.bf16.mxu1 %v3039_v53  ;;  %v3127_v51 = vld [vmem:[#allocation6 + $0x540] ss:$16 sps:$4 sm:$0xff]   ;;  %v3130_v53 = vld [vmem:[#allocation6 + $0x148] ss:$16 sps:$4 sm:$0xff]  }
  0x6a   :  { %1723 = vmatprep.subr.bf16.mxu0 %v3041_v54  ;;  %v3135_v54 = vld [vmem:[#allocation6 + $0x564] ss:$16 sps:$4 sm:$0xff]  }
  0x6c   :  { %1683 = vmatpush1.bf16.msra.mxu1 %v3043_v55  ;;  %v3138_v55 = vld [vmem:[#allocation6 + $0x16c] ss:$16 sps:$4 sm:$0xff]  }
  0x6d   :  { %1724 = vmatpush1.bf16.msra.mxu0 %v3044_v56  ;;  %1684 = vmatprep.subr.bf16.mxu1 %v3045_v57  ;;  %v3133_v56 = vld [vmem:[#allocation6 + $0x560] ss:$16 sps:$4 sm:$0xff]   ;;  %v3136_v57 = vld [vmem:[#allocation6 + $0x168] ss:$16 sps:$4 sm:$0xff]  }
  0x6e   :  { %1725 = vmatprep.subr.bf16.mxu0 %v3047_v58  ;;  %v3141_v58 = vld [vmem:[#allocation6 + $0x584] ss:$16 sps:$4 sm:$0xff]  }
  0x70   :  { %1685 = vmatpush1.bf16.msra.mxu1 %v3049_v59  ;;  %v3144_v59 = vld [vmem:[#allocation6 + $0x18c] ss:$16 sps:$4 sm:$0xff]  }
  0x71   :  { %1726 = vmatpush1.bf16.msra.mxu0 %v3050_v60  ;;  %1686 = vmatprep.subr.bf16.mxu1 %v3051_v61  ;;  %v3139_v60 = vld [vmem:[#allocation6 + $0x580] ss:$16 sps:$4 sm:$0xff]   ;;  %v3142_v61 = vld [vmem:[#allocation6 + $0x188] ss:$16 sps:$4 sm:$0xff]  }
  0x72   :  { %1727 = vmatprep.subr.bf16.mxu0 %v3053_v62  ;;  %v3147_v62 = vld [vmem:[#allocation6 + $0x5a4] ss:$16 sps:$4 sm:$0xff]  }
  0x74   :  { %1687 = vmatpush1.bf16.msra.mxu1 %v3055_v63  ;;  %v3150_v63 = vld [vmem:[#allocation6 + $0x1ac] ss:$16 sps:$4 sm:$0xff]  }
  0x75   :  { %1728 = vmatpush1.bf16.msra.mxu0 %v3056_v0  ;;  %1688 = vmatprep.subr.bf16.mxu1 %v3057_v1  ;;  %v3145_v0 = vld [vmem:[#allocation6 + $0x5a0] ss:$16 sps:$4 sm:$0xff]   ;;  %v3148_v1 = vld [vmem:[#allocation6 + $0x1a8] ss:$16 sps:$4 sm:$0xff]  }
  0x76   :  { %1729 = vmatprep.subr.bf16.mxu0 %v3059_v2  ;;  %v3153_v2 = vld [vmem:[#allocation6 + $0x5c4] ss:$16 sps:$4 sm:$0xff]  }
  0x78   :  { %1689 = vmatpush1.bf16.msra.mxu1 %v3061_v3  ;;  %v3156_v3 = vld [vmem:[#allocation6 + $0x1cc] ss:$16 sps:$4 sm:$0xff]  }
  0x79   :  { %1730 = vmatpush1.bf16.msra.mxu0 %v3062_v4  ;;  %1822 = vmatprep.subr.bf16.mxu1 %v3072_v6  ;;  %v3151_v4 = vld [vmem:[#allocation6 + $0x5c0] ss:$16 sps:$4 sm:$0xff]   ;;  %v3159_v6 = vld [vmem:[#allocation6 + $0x5e4] ss:$16 sps:$4 sm:$0xff]  }
  0x7a   :  { %1740 = vmatprep.subr.bf16.mxu0 %v3069_v5  ;;  %v3154_v5 = vld [vmem:[#allocation6 + $0x1c8] ss:$16 sps:$4 sm:$0xff]  }
  0x7b   :  { %1691 = vmatmul.mubr.bf16.vlgmr.msra.gmra.mrb[0].mxu1 %v3647_v7 }
  0x7c   :  { %1732 = vmatmul.mubr.bf16.vlgmr.msra.gmra.mrb[0].mxu0 %v3649_v8  ;;  %1823 = vmatpush1.bf16.msra.mxu1 %v3070_v10  ;;  %v3157_v10 = vld [vmem:[#allocation6 + $0x5e0] ss:$16 sps:$4 sm:$0xff]  }
  0x7d   :  { %1741 = vmatpush1.bf16.msra.mxu0 %v3067_v9  ;;  %1824 = vmatprep.subr.bf16.mxu1 %v3078_v12  ;;  %v3162_v9 = vld [vmem:[#allocation6 + $0x1ec] ss:$16 sps:$4 sm:$0xff]   ;;  %v3167_v12 = vld [vmem:[#allocation6 + $0x604] ss:$16 sps:$4 sm:$0xff]  }
  0x7e   :  { %1742 = vmatprep.subr.bf16.mxu0 %v3075_v11  ;;  %1854 = vmatprep.mubr.bf16.mxu1 %v3641_v48  ;;  %v3124_v48 = vld [vmem:[#allocation6 + $0x128] ss:$16 sps:$4 sm:$0xff]  }
  0x7f   :  { %1772 = vmatprep.mubr.bf16.mxu0 %v3658_v35  ;;  %v3160_v11 = vld [vmem:[#allocation6 + $0x1e8] ss:$16 sps:$4 sm:$0xff]  }
  0x80   :  { %1825 = vmatpush1.bf16.msra.mxu1 %v3076_v14  ;;  %v3663_v14 = vcombine.low %v3654_v33, %v3654_v33  ;;  %v3192_v33 = vld [vmem:[#allocation6 + $0x288] ss:$16 sps:$4 sm:$0xff]  }
  0x81   :  { %1743 = vmatpush1.bf16.msra.mxu0 %v3073_v13  ;;  %1826 = vmatprep.subr.bf16.mxu1 %v3084_v16  ;;  %v3170_v13 = vld [vmem:[#allocation6 + $0x20c] ss:$16 sps:$4 sm:$0xff]   ;;  %v3168_v16 = vld [vmem:[#allocation6 + $0x208] ss:$16 sps:$4 sm:$0xff]  }
  0x82   :  { %1744 = vmatprep.subr.bf16.mxu0 %v3081_v15  ;;  %v3165_v15 = vld [vmem:[#allocation6 + $0x600] ss:$16 sps:$4 sm:$0xff]  }
  0x84   :  { %1827 = vmatpush1.bf16.msra.mxu1 %v3082_v18  ;;  %v3176_v18 = vld [vmem:[#allocation6 + $0x22c] ss:$16 sps:$4 sm:$0xff]  }
  0x85   :  { %1745 = vmatpush1.bf16.msra.mxu0 %v3079_v17  ;;  %1828 = vmatprep.subr.bf16.mxu1 %v3090_v20  ;;  %v3173_v17 = vld [vmem:[#allocation6 + $0x624] ss:$16 sps:$4 sm:$0xff]  }
  0x86   :  { %1746 = vmatprep.subr.bf16.mxu0 %v3087_v19  ;;  %v3665_v19 = vld [vmem:[#allocation3 + $0x18] sm:$0xff] }
  0x87   :  { %v3669_v20 = vcombine.high %v3665_v19, %v3665_v19 }
  0x88   :  { %1829 = vmatpush1.bf16.msra.mxu1 %v3088_v22  ;;  %v3174_v22 = vld [vmem:[#allocation6 + $0x228] ss:$16 sps:$4 sm:$0xff]  }
  0x89   :  { %1747 = vmatpush1.bf16.msra.mxu0 %v3085_v21  ;;  %1830 = vmatprep.subr.bf16.mxu1 %v3096_v24  ;;  %v3171_v21 = vld [vmem:[#allocation6 + $0x620] ss:$16 sps:$4 sm:$0xff]   ;;  %v3182_v24 = vld [vmem:[#allocation6 + $0x24c] ss:$16 sps:$4 sm:$0xff]  }
  0x8a   :  { %1748 = vmatprep.subr.bf16.mxu0 %v3093_v23  ;;  %v3179_v23 = vld [vmem:[#allocation6 + $0x644] ss:$16 sps:$4 sm:$0xff]  }
  0x8c   :  { %1831 = vmatpush1.bf16.msra.mxu1 %v3094_v26  ;;  %v3180_v26 = vld [vmem:[#allocation6 + $0x248] ss:$16 sps:$4 sm:$0xff]  }
  0x8d   :  { %1749 = vmatpush1.bf16.msra.mxu0 %v3091_v25  ;;  %1832 = vmatprep.subr.bf16.mxu1 %v3102_v28  ;;  %v3177_v25 = vld [vmem:[#allocation6 + $0x640] ss:$16 sps:$4 sm:$0xff]  }
  0x8e   :  { %1750 = vmatprep.subr.bf16.mxu0 %v3099_v27  ;;  %v3185_v27 = vld [vmem:[#allocation6 + $0x664] ss:$16 sps:$4 sm:$0xff]   ;;  %v3183_v28 = vld [vmem:[#allocation6 + $0x660] ss:$16 sps:$4 sm:$0xff]  }
  0x90   :  { %1833 = vmatpush1.bf16.msra.mxu1 %v3100_v30  ;;  %v3191_v30 = vld [vmem:[#allocation6 + $0x684] ss:$16 sps:$4 sm:$0xff]  }
  0x91   :  { %1751 = vmatpush1.bf16.msra.mxu0 %v3097_v29  ;;  %1834 = vmatprep.subr.bf16.mxu1 %v3108_v32  ;;  %v3186_v29 = vld [vmem:[#allocation6 + $0x268] ss:$16 sps:$4 sm:$0xff]   ;;  %v3189_v32 = vld [vmem:[#allocation6 + $0x680] ss:$16 sps:$4 sm:$0xff]  }
  0x92   :  { %1752 = vmatprep.subr.bf16.mxu0 %v3105_v31  ;;  %v3194_v31 = vld [vmem:[#allocation6 + $0x28c] ss:$16 sps:$4 sm:$0xff]  }
  0x94   :  { %1835 = vmatpush1.bf16.msra.mxu1 %v3106_v36  ;;  %v3195_v36 = vld [vmem:[#allocation6 + $0x6a0] ss:$16 sps:$4 sm:$0xff]  }
  0x95   :  { %1753 = vmatpush1.bf16.msra.mxu0 %v3103_v34  ;;  %1836 = vmatprep.subr.bf16.mxu1 %v3114_v38  ;;  %v3200_v34 = vld [vmem:[#allocation6 + $0x2ac] ss:$16 sps:$4 sm:$0xff]   ;;  %v3203_v38 = vld [vmem:[#allocation6 + $0x6c4] ss:$16 sps:$4 sm:$0xff]  }
  0x96   :  { %1754 = vmatprep.subr.bf16.mxu0 %v3111_v37  ;;  %v3198_v37 = vld [vmem:[#allocation6 + $0x2a8] ss:$16 sps:$4 sm:$0xff]  }
  0x98   :  { %1837 = vmatpush1.bf16.msra.mxu1 %v3112_v40  ;;  %v3201_v40 = vld [vmem:[#allocation6 + $0x6c0] ss:$16 sps:$4 sm:$0xff]  }
  0x99   :  { %1755 = vmatpush1.bf16.msra.mxu0 %v3109_v39  ;;  %1838 = vmatprep.subr.bf16.mxu1 %v3120_v42  ;;  %v3206_v39 = vld [vmem:[#allocation6 + $0x2cc] ss:$16 sps:$4 sm:$0xff]   ;;  %v3209_v42 = vld [vmem:[#allocation6 + $0x6e4] ss:$16 sps:$4 sm:$0xff]  }
  0x9a   :  { %1756 = vmatprep.subr.bf16.mxu0 %v3117_v41  ;;  %v3204_v41 = vld [vmem:[#allocation6 + $0x2c8] ss:$16 sps:$4 sm:$0xff]  }
  0x9c   :  { %1839 = vmatpush1.bf16.msra.mxu1 %v3118_v44  ;;  %v3207_v44 = vld [vmem:[#allocation6 + $0x6e0] ss:$16 sps:$4 sm:$0xff]  }
  0x9d   :  { %1757 = vmatpush1.bf16.msra.mxu0 %v3115_v43  ;;  %1840 = vmatprep.subr.bf16.mxu1 %v3126_v46  ;;  %v3212_v43 = vld [vmem:[#allocation6 + $0x2ec] ss:$16 sps:$4 sm:$0xff]   ;;  %v3215_v46 = vld [vmem:[#allocation6 + $0x704] ss:$16 sps:$4 sm:$0xff]  }
  0x9e   :  { %1758 = vmatprep.subr.bf16.mxu0 %v3123_v45  ;;  %v3210_v45 = vld [vmem:[#allocation6 + $0x2e8] ss:$16 sps:$4 sm:$0xff]  }
  0xa0   :  { %1841 = vmatpush1.bf16.msra.mxu1 %v3124_v48  ;;  %v3213_v48 = vld [vmem:[#allocation6 + $0x700] ss:$16 sps:$4 sm:$0xff]  }
  0xa1   :  { %1759 = vmatpush1.bf16.msra.mxu0 %v3121_v47  ;;  %1842 = vmatprep.subr.bf16.mxu1 %v3132_v50  ;;  %v3218_v47 = vld [vmem:[#allocation6 + $0x30c] ss:$16 sps:$4 sm:$0xff]   ;;  %v3221_v50 = vld [vmem:[#allocation6 + $0x724] ss:$16 sps:$4 sm:$0xff]  }
  0xa2   :  { %1760 = vmatprep.subr.bf16.mxu0 %v3129_v49  ;;  %v3216_v49 = vld [vmem:[#allocation6 + $0x308] ss:$16 sps:$4 sm:$0xff]  }
  0xa4   :  { %1843 = vmatpush1.bf16.msra.mxu1 %v3130_v53  ;;  %v3219_v53 = vld [vmem:[#allocation6 + $0x720] ss:$16 sps:$4 sm:$0xff]  }
  0xa5   :  { %1761 = vmatpush1.bf16.msra.mxu0 %v3127_v51  ;;  %1844 = vmatprep.subr.bf16.mxu1 %v3138_v55  ;;  %v3224_v51 = vld [vmem:[#allocation6 + $0x32c] ss:$16 sps:$4 sm:$0xff]   ;;  %v3227_v55 = vld [vmem:[#allocation6 + $0x744] ss:$16 sps:$4 sm:$0xff]  }
  0xa6   :  { %1762 = vmatprep.subr.bf16.mxu0 %v3135_v54  ;;  %v3222_v54 = vld [vmem:[#allocation6 + $0x328] ss:$16 sps:$4 sm:$0xff]  }
  0xa8   :  { %1845 = vmatpush1.bf16.msra.mxu1 %v3136_v57  ;;  %v3225_v57 = vld [vmem:[#allocation6 + $0x740] ss:$16 sps:$4 sm:$0xff]  }
  0xa9   :  { %1763 = vmatpush1.bf16.msra.mxu0 %v3133_v56  ;;  %1846 = vmatprep.subr.bf16.mxu1 %v3144_v59  ;;  %v3230_v56 = vld [vmem:[#allocation6 + $0x34c] ss:$16 sps:$4 sm:$0xff]   ;;  %v3233_v59 = vld [vmem:[#allocation6 + $0x764] ss:$16 sps:$4 sm:$0xff]  }
  0xaa   :  { %1764 = vmatprep.subr.bf16.mxu0 %v3141_v58  ;;  %v3228_v58 = vld [vmem:[#allocation6 + $0x348] ss:$16 sps:$4 sm:$0xff]  }
  0xac   :  { %1847 = vmatpush1.bf16.msra.mxu1 %v3142_v61  ;;  %v3231_v61 = vld [vmem:[#allocation6 + $0x760] ss:$16 sps:$4 sm:$0xff]  }
  0xad   :  { %1765 = vmatpush1.bf16.msra.mxu0 %v3139_v60  ;;  %1848 = vmatprep.subr.bf16.mxu1 %v3150_v63  ;;  %v3236_v60 = vld [vmem:[#allocation6 + $0x36c] ss:$16 sps:$4 sm:$0xff]   ;;  %v3239_v63 = vld [vmem:[#allocation6 + $0x784] ss:$16 sps:$4 sm:$0xff]  }
  0xae   :  { %1766 = vmatprep.subr.bf16.mxu0 %v3147_v62  ;;  %v3234_v62 = vld [vmem:[#allocation6 + $0x368] ss:$16 sps:$4 sm:$0xff]  }
  0xb0   :  { %1849 = vmatpush1.bf16.msra.mxu1 %v3148_v1  ;;  %v3237_v1 = vld [vmem:[#allocation6 + $0x780] ss:$16 sps:$4 sm:$0xff]  }
  0xb1   :  { %1767 = vmatpush1.bf16.msra.mxu0 %v3145_v0  ;;  %1850 = vmatprep.subr.bf16.mxu1 %v3156_v3  ;;  %v3242_v0 = vld [vmem:[#allocation6 + $0x38c] ss:$16 sps:$4 sm:$0xff]   ;;  %v3245_v3 = vld [vmem:[#allocation6 + $0x7a4] ss:$16 sps:$4 sm:$0xff]  }
  0xb2   :  { %1768 = vmatprep.subr.bf16.mxu0 %v3153_v2  ;;  %v3240_v2 = vld [vmem:[#allocation6 + $0x388] ss:$16 sps:$4 sm:$0xff]  }
  0xb4   :  { %1851 = vmatpush1.bf16.msra.mxu1 %v3154_v5  ;;  %v3243_v5 = vld [vmem:[#allocation6 + $0x7a0] ss:$16 sps:$4 sm:$0xff]  }
  0xb5   :  { %1769 = vmatpush1.bf16.msra.mxu0 %v3151_v4  ;;  %1852 = vmatprep.subr.bf16.mxu1 %v3162_v9  ;;  %v3248_v4 = vld [vmem:[#allocation6 + $0x3ac] ss:$16 sps:$4 sm:$0xff]   ;;  %v3251_v9 = vld [vmem:[#allocation6 + $0x7c4] ss:$16 sps:$4 sm:$0xff]  }
  0xb6   :  { %1770 = vmatprep.subr.bf16.mxu0 %v3159_v6  ;;  %v3246_v6 = vld [vmem:[#allocation6 + $0x3a8] ss:$16 sps:$4 sm:$0xff]  }
  0xb8   :  { %1853 = vmatpush1.bf16.msra.mxu1 %v3160_v11  ;;  %v3249_v11 = vld [vmem:[#allocation6 + $0x7c0] ss:$16 sps:$4 sm:$0xff]  }
  0xb9   :  { %1771 = vmatpush1.bf16.msra.mxu0 %v3157_v10  ;;  %1863 = vmatprep.subr.bf16.mxu1 %v3170_v13  ;;  %v3254_v10 = vld [vmem:[#allocation6 + $0x3cc] ss:$16 sps:$4 sm:$0xff]   ;;  %v3257_v13 = vld [vmem:[#allocation6 + $0x7e4] ss:$16 sps:$4 sm:$0xff]  }
  0xba   :  { %1781 = vmatprep.subr.bf16.mxu0 %v3167_v12  ;;  %v3252_v12 = vld [vmem:[#allocation6 + $0x3c8] ss:$16 sps:$4 sm:$0xff]  }
  0xbb   :  { %1855 = vmatmul.mubr.bf16.vlgmr.msra.gmra.mrb[4].mxu1 %v3647_v7  ;;  %v3188_v7 = vld [vmem:[#allocation6 + $0x26c] ss:$16 sps:$4 sm:$0xff]  }
  0xbc   :  { %1773 = vmatmul.mubr.bf16.vlgmr.msra.gmra.mrb[0].mxu0 %v3663_v14  ;;  %1864 = vmatpush1.bf16.msra.mxu1 %v3168_v16  ;;  %v3255_v16 = vld [vmem:[#allocation6 + $0x7e0] ss:$16 sps:$4 sm:$0xff]  }
  0xbd   :  { %1782 = vmatpush1.bf16.msra.mxu0 %v3165_v15  ;;  %1865 = vmatprep.subr.bf16.mxu1 %v3176_v18  ;;  %v3260_v15 = vld [vmem:[#allocation6 + $0x3ec] ss:$16 sps:$4 sm:$0xff]  }
  0xbe   :  { %1783 = vmatprep.subr.bf16.mxu0 %v3173_v17  ;;  %1813 = vmatprep.mubr.bf16.mxu0 %v3669_v20  ;;  %v3258_v17 = vld [vmem:[#allocation6 + $0x3e8] ss:$16 sps:$4 sm:$0xff]   ;;  %v3265_v18 = vld [vmem:[#allocation6 + $0x40c] ss:$16 sps:$4 sm:$0xff]  }
  0xbf   :  { %1895 = vmatprep.mubr.bf16.mxu1 %v3643_v52  ;;  %v3197_v52 = vld [vmem:[#allocation6 + $0x6a4] ss:$16 sps:$4 sm:$0xff]  }
  0xc0   :  { %1866 = vmatpush1.bf16.msra.mxu1 %v3174_v22  ;;  %v3677_v22 = vcombine.low %v3665_v19, %v3665_v19  ;;  %v3362_v19 = vld [vmem:[#allocation8 + $0x10] ss:$8 sps:$4 sm:$0xff]  }
  0xc1   :  { %1784 = vmatpush1.bf16.msra.mxu0 %v3171_v21  ;;  %1867 = vmatprep.subr.bf16.mxu1 %v3182_v24  ;;  %v3263_v21 = vld [vmem:[#allocation6 + $0x408] ss:$16 sps:$4 sm:$0xff]  }
  0xc2   :  { %1785 = vmatprep.subr.bf16.mxu0 %v3179_v23  ;;  %v3268_v23 = vld [vmem:[#allocation6 + $0x42c] ss:$16 sps:$4 sm:$0xff]   ;;  %v3359_v24 = vld [vmem:[#allocation8] ss:$8 sps:$4 sm:$0xff]  }
  0xc4   :  { %1868 = vmatpush1.bf16.msra.mxu1 %v3180_v26  ;;  %v3266_v26 = vld [vmem:[#allocation6 + $0x428] ss:$16 sps:$4 sm:$0xff]  }
  0xc5   :  { %1786 = vmatpush1.bf16.msra.mxu0 %v3177_v25  ;;  %1869 = vmatprep.subr.bf16.mxu1 %v3188_v7  ;;  %v3361_v25 = vld [vmem:[#allocation8 + $0x4] ss:$8 sps:$4 sm:$0xff]  }
  0xc6   :  { %1787 = vmatprep.subr.bf16.mxu0 %v3185_v27  ;;  %v3364_v27 = vld [vmem:[#allocation8 + $0x14] ss:$8 sps:$4 sm:$0xff]  }
  0xc7   :  { %v3271_v7 = vld [vmem:[#allocation6 + $0x44c] ss:$16 sps:$4 sm:$0xff]  }
  0xc8   :  { %1870 = vmatpush1.bf16.msra.mxu1 %v3186_v29  ;;  %v3269_v29 = vld [vmem:[#allocation6 + $0x448] ss:$16 sps:$4 sm:$0xff]  }
  0xc9   :  { %1788 = vmatpush1.bf16.msra.mxu0 %v3183_v28  ;;  %1871 = vmatprep.subr.bf16.mxu1 %v3194_v31  ;;  %v3367_v28 = vld [vmem:[#allocation8 + $0x24] ss:$8 sps:$4 sm:$0xff]   ;;  %v3370_v31 = vld [vmem:[#allocation8 + $0x34] ss:$8 sps:$4 sm:$0xff]  }
  0xca   :  { %1789 = vmatprep.subr.bf16.mxu0 %v3191_v30  ;;  %v3274_v30 = vld [vmem:[#allocation6 + $0x46c] ss:$16 sps:$4 sm:$0xff]  }
  0xcc   :  { %1872 = vmatpush1.bf16.msra.mxu1 %v3192_v33  ;;  %v3368_v33 = vld [vmem:[#allocation8 + $0x30] ss:$8 sps:$4 sm:$0xff]  }
  0xcd   :  { %1790 = vmatpush1.bf16.msra.mxu0 %v3189_v32  ;;  %1873 = vmatprep.subr.bf16.mxu1 %v3200_v34  ;;  %v3272_v32 = vld [vmem:[#allocation6 + $0x468] ss:$16 sps:$4 sm:$0xff]  }
  0xce   :  { %1791 = vmatprep.subr.bf16.mxu0 %v3197_v52  ;;  %v3373_v52 = vld [vmem:[#allocation8 + $0x44] ss:$8 sps:$4 sm:$0xff]   ;;  %v3275_v34 = vld [vmem:[#allocation6 + $0x488] ss:$16 sps:$4 sm:$0xff]  }
  0xd0   :  { %1874 = vmatpush1.bf16.msra.mxu1 %v3198_v37  ;;  %v3371_v37 = vld [vmem:[#allocation8 + $0x40] ss:$8 sps:$4 sm:$0xff]  }
  0xd1   :  { %1792 = vmatpush1.bf16.msra.mxu0 %v3195_v36  ;;  %1875 = vmatprep.subr.bf16.mxu1 %v3206_v39  ;;  %v3280_v36 = vld [vmem:[#allocation6 + $0x4ac] ss:$16 sps:$4 sm:$0xff]   ;;  %v3278_v39 = vld [vmem:[#allocation6 + $0x4a8] ss:$16 sps:$4 sm:$0xff]  }
  0xd2   :  { %1793 = vmatprep.subr.bf16.mxu0 %v3203_v38  ;;  %v3376_v38 = vld [vmem:[#allocation8 + $0x54] ss:$8 sps:$4 sm:$0xff]  }
  0xd4   :  { %1876 = vmatpush1.bf16.msra.mxu1 %v3204_v41  ;;  %v3374_v41 = vld [vmem:[#allocation8 + $0x50] ss:$8 sps:$4 sm:$0xff]  }
  0xd5   :  { %1794 = vmatpush1.bf16.msra.mxu0 %v3201_v40  ;;  %1877 = vmatprep.subr.bf16.mxu1 %v3212_v43  ;;  %v3283_v40 = vld [vmem:[#allocation6 + $0x4cc] ss:$16 sps:$4 sm:$0xff]   ;;  %v3281_v43 = vld [vmem:[#allocation6 + $0x4c8] ss:$16 sps:$4 sm:$0xff]  }
  0xd6   :  { %1795 = vmatprep.subr.bf16.mxu0 %v3209_v42  ;;  %v3379_v42 = vld [vmem:[#allocation8 + $0x64] ss:$8 sps:$4 sm:$0xff]  }
  0xd8   :  { %1878 = vmatpush1.bf16.msra.mxu1 %v3210_v45  ;;  %v3377_v45 = vld [vmem:[#allocation8 + $0x60] ss:$8 sps:$4 sm:$0xff]  }
  0xd9   :  { %1796 = vmatpush1.bf16.msra.mxu0 %v3207_v44  ;;  %1879 = vmatprep.subr.bf16.mxu1 %v3218_v47  ;;  %v3286_v44 = vld [vmem:[#allocation6 + $0x4ec] ss:$16 sps:$4 sm:$0xff]   ;;  %v3284_v47 = vld [vmem:[#allocation6 + $0x4e8] ss:$16 sps:$4 sm:$0xff]  }
  0xda   :  { %1797 = vmatprep.subr.bf16.mxu0 %v3215_v46  ;;  %v3382_v46 = vld [vmem:[#allocation8 + $0x74] ss:$8 sps:$4 sm:$0xff]  }
  0xdc   :  { %1880 = vmatpush1.bf16.msra.mxu1 %v3216_v49  ;;  %v3380_v49 = vld [vmem:[#allocation8 + $0x70] ss:$8 sps:$4 sm:$0xff]  }
  0xdd   :  { %1798 = vmatpush1.bf16.msra.mxu0 %v3213_v48  ;;  %1881 = vmatprep.subr.bf16.mxu1 %v3224_v51  ;;  %v3289_v48 = vld [vmem:[#allocation6 + $0x50c] ss:$16 sps:$4 sm:$0xff]   ;;  %v3287_v51 = vld [vmem:[#allocation6 + $0x508] ss:$16 sps:$4 sm:$0xff]  }
  0xde   :  { %1799 = vmatprep.subr.bf16.mxu0 %v3221_v50  ;;  %v3385_v50 = vld [vmem:[#allocation8 + $0x84] ss:$8 sps:$4 sm:$0xff]  }
  0xe0   :  { %1882 = vmatpush1.bf16.msra.mxu1 %v3222_v54  ;;  %v3383_v54 = vld [vmem:[#allocation8 + $0x80] ss:$8 sps:$4 sm:$0xff]  }
  0xe1   :  { %1800 = vmatpush1.bf16.msra.mxu0 %v3219_v53  ;;  %1883 = vmatprep.subr.bf16.mxu1 %v3230_v56  ;;  %v3292_v53 = vld [vmem:[#allocation6 + $0x52c] ss:$16 sps:$4 sm:$0xff]   ;;  %v3290_v56 = vld [vmem:[#allocation6 + $0x528] ss:$16 sps:$4 sm:$0xff]  }
  0xe2   :  { %1801 = vmatprep.subr.bf16.mxu0 %v3227_v55  ;;  %v3388_v55 = vld [vmem:[#allocation8 + $0x94] ss:$8 sps:$4 sm:$0xff]  }
  0xe4   :  { %1884 = vmatpush1.bf16.msra.mxu1 %v3228_v58  ;;  %v3386_v58 = vld [vmem:[#allocation8 + $0x90] ss:$8 sps:$4 sm:$0xff]  }
  0xe5   :  { %1802 = vmatpush1.bf16.msra.mxu0 %v3225_v57  ;;  %1885 = vmatprep.subr.bf16.mxu1 %v3236_v60  ;;  %v3295_v57 = vld [vmem:[#allocation6 + $0x54c] ss:$16 sps:$4 sm:$0xff]   ;;  %v3293_v60 = vld [vmem:[#allocation6 + $0x548] ss:$16 sps:$4 sm:$0xff]  }
  0xe6   :  { %1803 = vmatprep.subr.bf16.mxu0 %v3233_v59  ;;  %v3391_v59 = vld [vmem:[#allocation8 + $0xa4] ss:$8 sps:$4 sm:$0xff]  }
  0xe8   :  { %1886 = vmatpush1.bf16.msra.mxu1 %v3234_v62  ;;  %v3389_v62 = vld [vmem:[#allocation8 + $0xa0] ss:$8 sps:$4 sm:$0xff]  }
  0xe9   :  { %1804 = vmatpush1.bf16.msra.mxu0 %v3231_v61  ;;  %1887 = vmatprep.subr.bf16.mxu1 %v3242_v0  ;;  %v3298_v61 = vld [vmem:[#allocation6 + $0x56c] ss:$16 sps:$4 sm:$0xff]   ;;  %v3296_v0 = vld [vmem:[#allocation6 + $0x568] ss:$16 sps:$4 sm:$0xff]  }
  0xea   :  { %1805 = vmatprep.subr.bf16.mxu0 %v3239_v63  ;;  %v3394_v63 = vld [vmem:[#allocation8 + $0xb4] ss:$8 sps:$4 sm:$0xff]  }
  0xec   :  { %1888 = vmatpush1.bf16.msra.mxu1 %v3240_v2  ;;  %v3392_v2 = vld [vmem:[#allocation8 + $0xb0] ss:$8 sps:$4 sm:$0xff]  }
  0xed   :  { %1806 = vmatpush1.bf16.msra.mxu0 %v3237_v1  ;;  %1889 = vmatprep.subr.bf16.mxu1 %v3248_v4  ;;  %v3301_v1 = vld [vmem:[#allocation6 + $0x58c] ss:$16 sps:$4 sm:$0xff]   ;;  %v3299_v4 = vld [vmem:[#allocation6 + $0x588] ss:$16 sps:$4 sm:$0xff]  }
  0xee   :  { %1807 = vmatprep.subr.bf16.mxu0 %v3245_v3  ;;  %v3397_v3 = vld [vmem:[#allocation8 + $0xc4] ss:$8 sps:$4 sm:$0xff]  }
  0xf0   :  { %1890 = vmatpush1.bf16.msra.mxu1 %v3246_v6  ;;  %v3395_v6 = vld [vmem:[#allocation8 + $0xc0] ss:$8 sps:$4 sm:$0xff]  }
  0xf1   :  { %1808 = vmatpush1.bf16.msra.mxu0 %v3243_v5  ;;  %1891 = vmatprep.subr.bf16.mxu1 %v3254_v10  ;;  %v3304_v5 = vld [vmem:[#allocation6 + $0x5ac] ss:$16 sps:$4 sm:$0xff]   ;;  %v3302_v10 = vld [vmem:[#allocation6 + $0x5a8] ss:$16 sps:$4 sm:$0xff]  }
  0xf2   :  { %1809 = vmatprep.subr.bf16.mxu0 %v3251_v9  ;;  %v3400_v9 = vld [vmem:[#allocation8 + $0xd4] ss:$8 sps:$4 sm:$0xff]  }
  0xf4   :  { %1892 = vmatpush1.bf16.msra.mxu1 %v3252_v12  ;;  %v3398_v12 = vld [vmem:[#allocation8 + $0xd0] ss:$8 sps:$4 sm:$0xff]  }
  0xf5   :  { %1810 = vmatpush1.bf16.msra.mxu0 %v3249_v11  ;;  %1893 = vmatprep.subr.bf16.mxu1 %v3260_v15  ;;  %v3307_v11 = vld [vmem:[#allocation6 + $0x5cc] ss:$16 sps:$4 sm:$0xff]  }
  0xf6   :  { %1811 = vmatprep.subr.bf16.mxu0 %v3257_v13  ;;  %v3305_v13 = vld [vmem:[#allocation6 + $0x5c8] ss:$16 sps:$4 sm:$0xff]   ;;  %v3310_v15 = vld [vmem:[#allocation6 + $0x5ec] ss:$16 sps:$4 sm:$0xff]  }
  0xf8   :  { %1894 = vmatpush1.bf16.msra.mxu1 %v3258_v17  ;;  %v3313_v17 = vld [vmem:[#allocation6 + $0x60c] ss:$16 sps:$4 sm:$0xff]  }
  0xf9   :  { %1812 = vmatpush1.bf16.msra.mxu0 %v3255_v16  ;;  %1904 = vmatprep.subr.bf16.mxu1 %v3265_v18  ;;  %v3308_v16 = vld [vmem:[#allocation6 + $0x5e8] ss:$16 sps:$4 sm:$0xff]  }
  0xfa   :  { %2394 = vmatprep.subr.bf16.mxu0 %v3361_v25  ;;  %v3311_v18 = vld [vmem:[#allocation6 + $0x608] ss:$16 sps:$4 sm:$0xff]  }
  0xfb   :  { %1896 = vmatmul.mubr.bf16.vlgmr.msra.gmra.mrb[4].mxu1 %v3649_v8  ;;  %v3365_v8 = vld [vmem:[#allocation8 + $0x20] ss:$8 sps:$4 sm:$0xff]  }
  0xfc   :  { %1814 = vmatmul.mubr.bf16.vlgmr.msra.gmra.mrb[0].mxu0 %v3677_v22  ;;  %1905 = vmatpush1.bf16.msra.mxu1 %v3263_v21  ;;  %v3316_v21 = vld [vmem:[#allocation6 + $0x62c] ss:$16 sps:$4 sm:$0xff]   ;;  %v3317_v25 = vld [vmem:[#allocation6 + $0x648] ss:$16 sps:$4 sm:$0xff]  }
  0xfd   :  { %1936 = vmatprep.mubr.bf16.mxu1 %v3658_v35  ;;  %1906 = vmatprep.subr.bf16.mxu1 %v3268_v23  ;;  %v3277_v35 = vld [vmem:[#allocation6 + $0x48c] ss:$16 sps:$4 sm:$0xff]   ;;  %v3314_v23 = vld [vmem:[#allocation6 + $0x628] ss:$16 sps:$4 sm:$0xff]  }
  0xfe   :  { %2395 = vmatpush1.bf16.msra.mxu0 %v3359_v24  ;;  %v3319_v24 = vld [vmem:[#allocation6 + $0x64c] ss:$16 sps:$4 sm:$0xff]  }
  0xff   :  { %2396 = vmatprep.subr.bf16.mxu0 %v3364_v27  ;;  %v3320_v27 = vld [vmem:[#allocation6 + $0x668] ss:$16 sps:$4 sm:$0xff]  }
 0x100   :  { %1907 = vmatpush1.bf16.msra.mxu1 %v3266_v26  ;;  %v3322_v26 = vld [vmem:[#allocation6 + $0x66c] ss:$16 sps:$4 sm:$0xff]  }
 0x101   :  { %1908 = vmatprep.subr.bf16.mxu1 %v3271_v7  ;;  %v3325_v7 = vld [vmem:[#allocation6 + $0x68c] ss:$16 sps:$4 sm:$0xff]  }
 0x102   :  { %2397 = vmatpush1.bf16.msra.mxu0 %v3362_v19  ;;  %v3323_v19 = vld [vmem:[#allocation6 + $0x688] ss:$16 sps:$4 sm:$0xff]  }
 0x103   :  { %2398 = vmatprep.subr.bf16.mxu0 %v3367_v28  ;;  %v3328_v28 = vld [vmem:[#allocation6 + $0x6ac] ss:$16 sps:$4 sm:$0xff]  }
 0x104   :  { %1909 = vmatpush1.bf16.msra.mxu1 %v3269_v29  ;;  %v3331_v29 = vld [vmem:[#allocation6 + $0x6cc] ss:$16 sps:$4 sm:$0xff]  }
 0x105   :  { %1910 = vmatprep.subr.bf16.mxu1 %v3274_v30 }
 0x106   :  { %2399 = vmatpush1.bf16.msra.mxu0 %v3365_v8  ;;  %v3403_v8 = vld [vmem:[#allocation8 + $0xe4] ss:$8 sps:$4 sm:$0xff]  }
 0x107   :  { %2400 = vmatprep.subr.bf16.mxu0 %v3370_v31 }
 0x108   :  { %1911 = vmatpush1.bf16.msra.mxu1 %v3272_v32  ;;  %v3329_v32 = vld [vmem:[#allocation6 + $0x6c8] ss:$16 sps:$4 sm:$0xff]  }
 0x109   :  { %1912 = vmatprep.subr.bf16.mxu1 %v3277_v35  ;;  %v3401_v35 = vld [vmem:[#allocation8 + $0xe0] ss:$8 sps:$4 sm:$0xff]  }
 0x10a   :  { %2401 = vmatpush1.bf16.msra.mxu0 %v3368_v33 }
 0x10b   :  { %2402 = vmatprep.subr.bf16.mxu0 %v3373_v52  ;;  %v3334_v52 = vld [vmem:[#allocation6 + $0x6ec] ss:$16 sps:$4 sm:$0xff]  }
 0x10c   :  { %1913 = vmatpush1.bf16.msra.mxu1 %v3275_v34  ;;  %v3406_v34 = vld [vmem:[#allocation8 + $0xf4] ss:$8 sps:$4 sm:$0xff]  }
 0x10d   :  { %1914 = vmatprep.subr.bf16.mxu1 %v3280_v36  ;;  %v3332_v36 = vld [vmem:[#allocation6 + $0x6e8] ss:$16 sps:$4 sm:$0xff]  }
 0x10e   :  { %2403 = vmatpush1.bf16.msra.mxu0 %v3371_v37  ;;  %v3404_v37 = vld [vmem:[#allocation8 + $0xf0] ss:$8 sps:$4 sm:$0xff]  }
 0x10f   :  { %2404 = vmatprep.subr.bf16.mxu0 %v3376_v38  ;;  %v3337_v38 = vld [vmem:[#allocation6 + $0x70c] ss:$16 sps:$4 sm:$0xff]  }
 0x110   :  { %1915 = vmatpush1.bf16.msra.mxu1 %v3278_v39  ;;  %v3335_v39 = vld [vmem:[#allocation6 + $0x708] ss:$16 sps:$4 sm:$0xff]  }
 0x111   :  { %1916 = vmatprep.subr.bf16.mxu1 %v3283_v40  ;;  %v3340_v40 = vld [vmem:[#allocation6 + $0x72c] ss:$16 sps:$4 sm:$0xff]  }
 0x112   :  { %2405 = vmatpush1.bf16.msra.mxu0 %v3374_v41  ;;  %v3409_v41 = vld [vmem:[#allocation8 + $0x104] ss:$8 sps:$4 sm:$0xff]  }
 0x113   :  { %2406 = vmatprep.subr.bf16.mxu0 %v3379_v42  ;;  %v3338_v42 = vld [vmem:[#allocation6 + $0x728] ss:$16 sps:$4 sm:$0xff]  }
 0x114   :  { %1917 = vmatpush1.bf16.msra.mxu1 %v3281_v43  ;;  %v3343_v43 = vld [vmem:[#allocation6 + $0x74c] ss:$16 sps:$4 sm:$0xff]  }
 0x115   :  { %1918 = vmatprep.subr.bf16.mxu1 %v3286_v44  ;;  %v3341_v44 = vld [vmem:[#allocation6 + $0x748] ss:$16 sps:$4 sm:$0xff]  }
 0x116   :  { %2407 = vmatpush1.bf16.msra.mxu0 %v3377_v45  ;;  %v3346_v45 = vld [vmem:[#allocation6 + $0x76c] ss:$16 sps:$4 sm:$0xff]  }
 0x117   :  { %2408 = vmatprep.subr.bf16.mxu0 %v3382_v46  ;;  %v3344_v46 = vld [vmem:[#allocation6 + $0x768] ss:$16 sps:$4 sm:$0xff]  }
 0x118   :  { %1919 = vmatpush1.bf16.msra.mxu1 %v3284_v47  ;;  %v3349_v47 = vld [vmem:[#allocation6 + $0x78c] ss:$16 sps:$4 sm:$0xff]  }
 0x119   :  { %1920 = vmatprep.subr.bf16.mxu1 %v3289_v48  ;;  %v3347_v48 = vld [vmem:[#allocation6 + $0x788] ss:$16 sps:$4 sm:$0xff]  }
 0x11a   :  { %2409 = vmatpush1.bf16.msra.mxu0 %v3380_v49  ;;  %v3352_v49 = vld [vmem:[#allocation6 + $0x7ac] ss:$16 sps:$4 sm:$0xff]  }
 0x11b   :  { %2410 = vmatprep.subr.bf16.mxu0 %v3385_v50  ;;  %v3350_v50 = vld [vmem:[#allocation6 + $0x7a8] ss:$16 sps:$4 sm:$0xff]  }
 0x11c   :  { %1921 = vmatpush1.bf16.msra.mxu1 %v3287_v51  ;;  %v3355_v51 = vld [vmem:[#allocation6 + $0x7cc] ss:$16 sps:$4 sm:$0xff]  }
 0x11d   :  { %1922 = vmatprep.subr.bf16.mxu1 %v3292_v53  ;;  %v3353_v53 = vld [vmem:[#allocation6 + $0x7c8] ss:$16 sps:$4 sm:$0xff]  }
 0x11e   :  { %2411 = vmatpush1.bf16.msra.mxu0 %v3383_v54  ;;  %v3358_v54 = vld [vmem:[#allocation6 + $0x7ec] ss:$16 sps:$4 sm:$0xff]  }
 0x11f   :  { %2412 = vmatprep.subr.bf16.mxu0 %v3388_v55  ;;  %v3356_v55 = vld [vmem:[#allocation6 + $0x7e8] ss:$16 sps:$4 sm:$0xff]  }
 0x120   :  { %1923 = vmatpush1.bf16.msra.mxu1 %v3290_v56  ;;  %v330_v56 = vlaneseq }
 0x121   :  { %1924 = vmatprep.subr.bf16.mxu1 %v3295_v57 }
 0x122   :  { %2413 = vmatpush1.bf16.msra.mxu0 %v3386_v58  ;;  %v3685_v57 = vshrl.u32 %v330_v56, 7 }
 0x123   :  { %2414 = vmatprep.subr.bf16.mxu0 %v3391_v59  ;;  %v3693_v59 = vld [vmem:[%s3731_s2] sm:$0xf] }
 0x124   :  { %1925 = vmatpush1.bf16.msra.mxu1 %v3293_v60  ;;  %v3688_v58 = vsub.s32 0, %v3685_v57  ;;  %v3696_v60 = vsub.s32 1, %v3685_v57 }
 0x125   :  { %1926 = vmatprep.subr.bf16.mxu1 %v3298_v61 }
 0x126   :  { %2415 = vmatpush1.bf16.msra.mxu0 %v3389_v62  ;;  %v333_v61 = vrot.slane %v3693_v59, %v3688_v58 }
 0x127   :  { %2416 = vmatprep.subr.bf16.mxu0 %v3394_v63 }
 0x128   :  { %1927 = vmatpush1.bf16.msra.mxu1 %v3296_v0 }
 0x129   :  { %1928 = vmatprep.subr.bf16.mxu1 %v3301_v1 }
 0x12a   :  { %2417 = vmatpush1.bf16.msra.mxu0 %v3392_v2 }
 0x12b   :  { %2418 = vmatprep.subr.bf16.mxu0 %v3397_v3 }
 0x12c   :  { %1929 = vmatpush1.bf16.msra.mxu1 %v3299_v4 }
 0x12d   :  { %1930 = vmatprep.subr.bf16.mxu1 %v3304_v5 }
 0x12e   :  { %2419 = vmatpush1.bf16.msra.mxu0 %v3395_v6 }
 0x12f   :  { %2420 = vmatprep.subr.bf16.mxu0 %v3400_v9 }
 0x130   :  { %1931 = vmatpush1.bf16.msra.mxu1 %v3302_v10 }
 0x131   :  { %1932 = vmatprep.subr.bf16.mxu1 %v3307_v11 }
 0x132   :  { %2421 = vmatpush1.bf16.msra.mxu0 %v3398_v12 }
 0x133   :  { %2422 = vmatprep.subr.bf16.mxu0 %v3403_v8  ;;  %v3436_v8 = vld [vmem:[#allocation8 + $0x194] ss:$8 sps:$4 sm:$0xff]  }
 0x134   :  { %1933 = vmatpush1.bf16.msra.mxu1 %v3305_v13  ;;  %v3407_v13 = vld [vmem:[#allocation8 + $0x100] ss:$8 sps:$4 sm:$0xff]  }
 0x135   :  { %1934 = vmatprep.subr.bf16.mxu1 %v3310_v15 }
 0x136   :  { %2423 = vmatpush1.bf16.msra.mxu0 %v3401_v35  ;;  %v3437_v35 = vld [vmem:[#allocation8 + $0x1a0] ss:$8 sps:$4 sm:$0xff]  }
 0x137   :  { %2424 = vmatprep.subr.bf16.mxu0 %v3406_v34  ;;  %v3445_v34 = vld [vmem:[#allocation8 + $0x1c4] ss:$8 sps:$4 sm:$0xff]  }
 0x138   :  { %1935 = vmatpush1.bf16.msra.mxu1 %v3308_v16  ;;  %v3412_v16 = vld [vmem:[#allocation8 + $0x114] ss:$8 sps:$4 sm:$0xff]  }
 0x139   :  { %1945 = vmatprep.subr.bf16.mxu1 %v3313_v17  ;;  %v3410_v17 = vld [vmem:[#allocation8 + $0x110] ss:$8 sps:$4 sm:$0xff]  }
 0x13a   :  { %2425 = vmatpush1.bf16.msra.mxu0 %v3404_v37  ;;  %v3448_v37 = vld [vmem:[#allocation8 + $0x1d4] ss:$8 sps:$4 sm:$0xff]  }
 0x13b   :  { %1937 = vmatmul.mubr.bf16.vlgmr.msra.gmra.mrb[4].mxu1 %v3663_v14  ;;  %v3326_v14 = vld [vmem:[#allocation6 + $0x6a8] ss:$16 sps:$4 sm:$0xff]   ;;  %2435 = vmatprep.subr.bf16.mxu0 %v3409_v41  ;;  %v3454_v41 = vld [vmem:[#allocation8 + $0x1f4] ss:$8 sps:$4 sm:$0xff]  }
 0x13c   :  { %1946 = vmatpush1.bf16.msra.mxu1 %v3311_v18  ;;  %1977 = vmatprep.mubr.bf16.mxu1 %v3669_v20  ;;  %v3415_v18 = vld [vmem:[#allocation8 + $0x124] ss:$8 sps:$4 sm:$0xff]  }
 0x13d   :  { %1947 = vmatprep.subr.bf16.mxu1 %v3316_v21  ;;  %v3413_v21 = vld [vmem:[#allocation8 + $0x120] ss:$8 sps:$4 sm:$0xff]  }
 0x140   :  { %1948 = vmatpush1.bf16.msra.mxu1 %v3314_v23  ;;  %v3418_v23 = vld [vmem:[#allocation8 + $0x134] ss:$8 sps:$4 sm:$0xff]  }
 0x141   :  { %1949 = vmatprep.subr.bf16.mxu1 %v3319_v24  ;;  %v3416_v24 = vld [vmem:[#allocation8 + $0x130] ss:$8 sps:$4 sm:$0xff]  }
 0x144   :  { %1950 = vmatpush1.bf16.msra.mxu1 %v3317_v25  ;;  %v3421_v25 = vld [vmem:[#allocation8 + $0x144] ss:$8 sps:$4 sm:$0xff]  }
 0x145   :  { %1951 = vmatprep.subr.bf16.mxu1 %v3322_v26  ;;  %v3419_v26 = vld [vmem:[#allocation8 + $0x140] ss:$8 sps:$4 sm:$0xff]  }
 0x148   :  { %1952 = vmatpush1.bf16.msra.mxu1 %v3320_v27  ;;  %v3424_v27 = vld [vmem:[#allocation8 + $0x154] ss:$8 sps:$4 sm:$0xff]  }
 0x149   :  { %1953 = vmatprep.subr.bf16.mxu1 %v3325_v7  ;;  %v3422_v7 = vld [vmem:[#allocation8 + $0x150] ss:$8 sps:$4 sm:$0xff]  }
 0x14c   :  { %1954 = vmatpush1.bf16.msra.mxu1 %v3323_v19  ;;  %v3427_v19 = vld [vmem:[#allocation8 + $0x164] ss:$8 sps:$4 sm:$0xff]  }
 0x14d   :  { %1955 = vmatprep.subr.bf16.mxu1 %v3328_v28  ;;  %v3425_v28 = vld [vmem:[#allocation8 + $0x160] ss:$8 sps:$4 sm:$0xff]  }
 0x14e   :  { %v1692_v30 = vpop.f32.mrb[0].mxu1 }
 0x14f   :  { %v1694_v20 = vpop.f32.mrb[1].mxu1  ;;  %v1693_v62 = vadd.f32 %v1692_v30, %v333_v61  ;;  %v3433_v30 = vld [vmem:[#allocation8 + $0x184] ss:$8 sps:$4 sm:$0xff]  }
 0x150   :  { %v1696_v31 = vpop.f32.mrb[2].mxu1  ;;  %1956 = vmatpush1.bf16.msra.mxu1 %v3326_v14  ;;  %v3430_v14 = vld [vmem:[#allocation8 + $0x174] ss:$8 sps:$4 sm:$0xff]  }
 0x151   :  { %v1697_v33 = vpop.f32.mrb[3].mxu1  ;;  %1957 = vmatprep.subr.bf16.mxu1 %v3331_v29  ;;  %v3428_v29 = vld [vmem:[#allocation8 + $0x170] ss:$8 sps:$4 sm:$0xff]  }
 0x152   :  { %v3434_v31 = vld [vmem:[#allocation8 + $0x190] ss:$8 sps:$4 sm:$0xff]   ;;  %v3442_v33 = vld [vmem:[#allocation8 + $0x1b4] ss:$8 sps:$4 sm:$0xff]  }
 0x154   :  { %1958 = vmatpush1.bf16.msra.mxu1 %v3329_v32  ;;  %v3439_v32 = vld [vmem:[#allocation8 + $0x1a4] ss:$8 sps:$4 sm:$0xff]  }
 0x155   :  { %1959 = vmatprep.subr.bf16.mxu1 %v3334_v52  ;;  %v3440_v52 = vld [vmem:[#allocation8 + $0x1b0] ss:$8 sps:$4 sm:$0xff]  }
 0x158   :  { %1960 = vmatpush1.bf16.msra.mxu1 %v3332_v36  ;;  %v3443_v36 = vld [vmem:[#allocation8 + $0x1c0] ss:$8 sps:$4 sm:$0xff]  }
 0x159   :  { %1961 = vmatprep.subr.bf16.mxu1 %v3337_v38  ;;  %v3446_v38 = vld [vmem:[#allocation8 + $0x1d0] ss:$8 sps:$4 sm:$0xff]  }
 0x15c   :  { %1962 = vmatpush1.bf16.msra.mxu1 %v3335_v39  ;;  %v3451_v39 = vld [vmem:[#allocation8 + $0x1e4] ss:$8 sps:$4 sm:$0xff]  }
 0x15d   :  { %1963 = vmatprep.subr.bf16.mxu1 %v3340_v40  ;;  %v3449_v40 = vld [vmem:[#allocation8 + $0x1e0] ss:$8 sps:$4 sm:$0xff]  }
 0x160   :  { %1964 = vmatpush1.bf16.msra.mxu1 %v3338_v42  ;;  %v3452_v42 = vld [vmem:[#allocation8 + $0x1f0] ss:$8 sps:$4 sm:$0xff]  }
 0x161   :  { %1965 = vmatprep.subr.bf16.mxu1 %v3343_v43  ;;  %v340_v43 = vsub.s32 2, %v3685_v57 }
 0x164   :  { %1966 = vmatpush1.bf16.msra.mxu1 %v3341_v44  ;;  %v344_v44 = vsub.s32 3, %v3685_v57  ;;  %v2480_v57 = vld [vmem:[%s3734_s5] sm:$0x3] }
 0x165   :  { %1967 = vmatprep.subr.bf16.mxu1 %v3346_v45  ;;  %v341_v45 = vrot.slane %v3693_v59, %v340_v43 }
 0x168   :  { %1968 = vmatpush1.bf16.msra.mxu1 %v3344_v46  ;;  %v345_v46 = vrot.slane %v3693_v59, %v344_v44 }
 0x169   :  { %1969 = vmatprep.subr.bf16.mxu1 %v3349_v47 }
 0x16c   :  { %1970 = vmatpush1.bf16.msra.mxu1 %v3347_v48 }
 0x16d   :  { %1971 = vmatprep.subr.bf16.mxu1 %v3352_v49 }
 0x170   :  { %1972 = vmatpush1.bf16.msra.mxu1 %v3350_v50 }
 0x171   :  { %1973 = vmatprep.subr.bf16.mxu1 %v3355_v51 }
 0x174   :  { %1974 = vmatpush1.bf16.msra.mxu1 %v3353_v53 }
 0x175   :  { %1975 = vmatprep.subr.bf16.mxu1 %v3358_v54 }
 0x178   :  { %1976 = vmatpush1.bf16.msra.mxu1 %v3356_v55 }
 0x17b   :  { %1978 = vmatmul.mubr.bf16.vlgmr.msra.gmra.mrb[4].mxu1 %v3677_v22  ;;  %v337_v22 = vrot.slane %v3693_v59, %v3696_v60  ;;  %v2499_v59 = vrot.slane %v2480_v57, %v3696_v60 }
 0x17d   :  { %v1695_v63 = vadd.f32 %v1694_v20, %v337_v22  ;;  %v3431_v20 = vld [vmem:[#allocation8 + $0x180] ss:$8 sps:$4 sm:$0xff]   ;;  %2566 = vmatprep.mubr.f32.mxu1 %v2499_v59 }
 0x1cf   :  { %v1815_v0 = vpop.f32.mrb[0].mxu0 }
 0x1d0   :  { %v2926_v1 = vadd.f32 %v1815_v0, %v1693_v62  ;;  %v1817_v2 = vpop.f32.mrb[1].mxu0  ;;  %v3560_v0 = vmov 0  }
 0x1d1   :  { %v2928_v3 = vadd.f32 %v1817_v2, %v1695_v63  ;;  %v1819_v4 = vpop.f32.mrb[2].mxu0  ;;  %v2481_v63 = vld [vmem:[#allocation2] sm:$0x1]  ;;  %2966 = vset.pattern.permute.xlu0 %v3560_v0 }
 0x1d2   :  { %v1986_v5 = vmul.f32 0.2, %v2926_v1  ;;  %v1820_v6 = vpop.f32.mrb[3].mxu0  ;;  %2484 = vperm.xlu0 %2966, %v2481_v63  }
 0x1d3   :  { %v1987_v9 = vmul.f32 0.2, %v2928_v3 }
 0x1d4   :  { %v1990_v10 = vmax.f32 %v2926_v1, %v1986_v5  ;;  %v2062_v1 = vld [vmem:[%s3733_s4] sm:$0x3]  ;;  %s3561_s4 = smov [#allocation9]  }
 0x1d5   :  { %v1991_v11 = vmax.f32 %v2928_v3, %v1987_v9  ;;  %v2067_v2 = vrot.slane %v2062_v1, %v3688_v58  ;;  %v2071_v3 = vrot.slane %v2062_v1, %v3696_v60  ;;  %s2586_s5 = sshll.u32 %s3561_s4, 4  ;;  %s2587_s5 = int_to_ptr.vmem [resolvable:$true] %s2586_s5 }
 0x1d6   :  { %v1994_v15 = vpack.c.bf16 %v1990_v10, %v1990_v10  ;;  %s3525_s20 = scalar_lea.vmem %s2587_s5, 16  ;;  %s3529_s21 = scalar_lea.vmem %s2587_s5, 32 }
 0x1d7   :  { %v1995_v12 = vpack.c.bf16 %v1991_v11, %v1991_v11  ;;  %p3526_p10 = scmp.ne.s32.totalorder %s2587_s5, %s3525_s20  ;;  %p3530_p11 = scmp.lt.s32.totalorder %s2587_s5, %s2587_s5 }
 0x1d8   :  { %p3531_p12 = scmp.lt.s32.totalorder %s3529_s21, %s3525_s20 }
 0x1d9   :  { %2426 = vmatprep.mubr.bf16.mxu0 %v1995_v12 }
 0x1da   :  { %2427 = vmatmul.mubr.bf16.vlgmr.msra.gmra.mrb[4].mxu0 %v1994_v15  ;;  %p3532_p13 = por %p3531_p12, %p3530_p11 }
 0x1db   :  { %2436 = vmatpush1.bf16.msra.mxu0 %v3407_v13 }
 0x1dc   :  { %2437 = vmatprep.subr.bf16.mxu0 %v3412_v16  ;;  %p3533_p0 = pnand %p3532_p13, %p3526_p10 }
 0x1df   :  { %2438 = vmatpush1.bf16.msra.mxu0 %v3410_v17  ;;  %v2495_v17 = vrot.slane %v2480_v57, %v3688_v58 }
 0x1e0   :  { %2439 = vmatprep.subr.bf16.mxu0 %v3415_v18 }
 0x1e3   :  { %2440 = vmatpush1.bf16.msra.mxu0 %v3413_v21 }
 0x1e4   :  { %2441 = vmatprep.subr.bf16.mxu0 %v3418_v23 }
 0x1e7   :  { %2442 = vmatpush1.bf16.msra.mxu0 %v3416_v24 }
 0x1e8   :  { %2443 = vmatprep.subr.bf16.mxu0 %v3421_v25 }
 0x1eb   :  { %2444 = vmatpush1.bf16.msra.mxu0 %v3419_v26 }
 0x1ec   :  { %2445 = vmatprep.subr.bf16.mxu0 %v3424_v27 }
 0x1ef   :  { %2446 = vmatpush1.bf16.msra.mxu0 %v3422_v7 }
 0x1f0   :  { %2447 = vmatprep.subr.bf16.mxu0 %v3427_v19 }
 0x1f3   :  { %2448 = vmatpush1.bf16.msra.mxu0 %v3425_v28 }
 0x1f4   :  { %2449 = vmatprep.subr.bf16.mxu0 %v3430_v14 }
 0x1f7   :  { %2450 = vmatpush1.bf16.msra.mxu0 %v3428_v29 }
 0x1f8   :  { %2451 = vmatprep.subr.bf16.mxu0 %v3433_v30 }
 0x1fb   :  { %2452 = vmatpush1.bf16.msra.mxu0 %v3431_v20 }
 0x1fc   :  { %2453 = vmatprep.subr.bf16.mxu0 %v3436_v8 }
 0x1ff   :  { %2454 = vmatpush1.bf16.msra.mxu0 %v3434_v31 }
 0x200   :  { %2455 = vmatprep.subr.bf16.mxu0 %v3439_v32 }
 0x203   :  { %2456 = vmatpush1.bf16.msra.mxu0 %v3437_v35 }
 0x204   :  { %2457 = vmatprep.subr.bf16.mxu0 %v3442_v33 }
 0x207   :  { %2458 = vmatpush1.bf16.msra.mxu0 %v3440_v52 }
 0x208   :  { %2459 = vmatprep.subr.bf16.mxu0 %v3445_v34 }
 0x20b   :  { %2460 = vmatpush1.bf16.msra.mxu0 %v3443_v36 }
 0x20c   :  { %2461 = vmatprep.subr.bf16.mxu0 %v3448_v37 }
 0x20f   :  { %2462 = vmatpush1.bf16.msra.mxu0 %v3446_v38 }
 0x210   :  { %2463 = vmatprep.subr.bf16.mxu0 %v3451_v39 }
 0x213   :  { %2464 = vmatpush1.bf16.msra.mxu0 %v3449_v40 }
 0x214   :  { %2465 = vmatprep.subr.bf16.mxu0 %v3454_v41 }
 0x217   :  { %2466 = vmatpush1.bf16.msra.mxu0 %v3452_v42 }
 0x24e   :  { %v1979_v47 = vpop.f32.mrb[4].mxu1 }
 0x24f   :  { %v2929_v48 = vadd.f32 %v1979_v47, %v341_v45  ;;  %v1981_v49 = vpop.f32.mrb[5].mxu1 }
 0x250   :  { %v2930_v50 = vadd.f32 %v1981_v49, %v345_v46  ;;  %v1983_v51 = vpop.f32.mrb[6].mxu1 }
 0x251   :  { %v1988_v53 = vmul.f32 0.2, %v2929_v48  ;;  %v1984_v54 = vpop.f32.mrb[7].mxu1  ;;  %v2485_v18 = vpop.permute.xlu0 %2484 }
 0x252   :  { %v1989_v55 = vmul.f32 0.2, %v2930_v50  ;;  %v2490_v21 = vrot.slane %v2485_v18, %v3688_v58 }
 0x253   :  { %v1992_v56 = vmax.f32 %v2929_v48, %v1988_v53 }
 0x254   :  { %v1993_v61 = vmax.f32 %v2930_v50, %v1989_v55 }
 0x255   :  { %v1996_v62 = vpack.c.bf16 %v1992_v56, %v1992_v56 }
 0x256   :  { %v1997_v22 = vpack.c.bf16 %v1993_v61, %v1993_v61 }
 0x258   :  { %2467 = vmatprep.mubr.bf16.mxu0 %v1997_v22 }
 0x259   :  { %2468 = vmatmul.mubr.bf16.vlgmr.msra.gmra.mrb[4].mxu0 %v1996_v62 }
 0x32c   :  { %v2469_v4 = vpop.f32.mrb[4].mxu0 }
 0x32d   :  { %v2931_v5 = vadd.f32 %v2469_v4, %v2067_v2  ;;  %v2471_v6 = vpop.f32.mrb[5].mxu0 }
 0x32e   :  { %v2932_v9 = vadd.f32 %v2471_v6, %v2071_v3  ;;  %v2473_v10 = vpop.f32.mrb[6].mxu0 }
 0x32f   :  { %v2476_v11 = vmul.f32 0.2, %v2931_v5  ;;  %v2474_v12 = vpop.f32.mrb[7].mxu0 }
 0x330   :  { %v2477_v13 = vmul.f32 0.2, %v2932_v9 }
 0x331   :  { %v2478_v16 = vmax.f32 %v2931_v5, %v2476_v11 }
 0x332   :  { %v2479_v15 = vmax.f32 %v2932_v9, %v2477_v13 }
 0x334   :  { %2502 = vmatprep.subr.mxu1 %v2479_v15 }
 0x335   :  { %2503 = vmatpush1.xpose.msra.mxu1 %v2478_v16 }
 0x338   :  { %2567 = vmatmul.mubr.f32.vlgmr.msra.gmra.mrb[8].mxu1 %v2495_v17 }
 0x40b   :  { %v2568_v23 = vpop.f32.mrb[8].mxu1 }
 0x40c   :  { %v2569_v60 = vadd.f32 %v2568_v23, %v2490_v21  ;;  %v2570_v24 = vpop.f32.mrb[9].mxu1 }
 0x40e   :  { %v2924_v25 = vmul.f32 -1.442695, %v2569_v60 }
 0x410   :  { %3455 = vpow2.f32 %v2924_v25 }
 0x41a   :  { %v3456_v26 = vpop.eup %3455 }
 0x41b   :  { %v2575_v27 = vadd.f32 1.0, %v3456_v26 }
 0x41d   :  { %3457 = vrcp.f32 %v2575_v27 }
 0x427   :  { %v3458_v7 = vpop.eup %3457 }
 0x428   :  { %2579 = vst.msk [vmem:[#allocation9] sm:$0x1] %vm2578_vm0, %v3458_v7 }
 0x429   :  { %3536 = shalt.err (!%p3533_p0)
}
 0x42a   :  { %s3537_s24 = scalar_lea.hbm %s3736_s7, 16 }
 0x42b   :  { %p3538_p1 = scmp.ne.s32.totalorder %s3736_s7, %s3537_s24  ;;  %p3541_p2 = scmp.lt.u32.totalorder %s3537_s24, %s3736_s7 }
 0x42d   :  { %p3543_p3 = pnand %p3541_p2, %p3538_p1 }
 0x42f   :  { %3546 = shalt.err (!%p3543_p3)
}
 0x430   :  { %2589 = dma.vmem_to_hbm [thread:$0]  %s2587_s5, 16, %s3736_s7, [#allocation5]  }
 0x431   :  { %3551 = dma.done.wait [#allocation5], 16  }
 0x432   :  { %3552 = vsyncadd [#allocation5], 4294967280 }
 0x433   :  { %2593 = vsyncpa [#allocation4], 1 }
 0x434   :  { %2594 = vsyncpa [#allocation7], 1 }
 0x435   :  { %2595 = vsyncpa [#allocation5], 1 }

</bundles_post_ra>
